<compile_context>
chip_gen: v7x
topology: tpu7x:2x2x1
jax: 0.10.0
libtpu: 0.0.40
codegen_flags: <defaults>
</compile_context>

<pallas_src>
import functools

import jax
import jax.numpy as jnp
from jax import lax
from jax.experimental import pallas as pl
from jax.experimental.pallas import tpu as pltpu

KH = KW = 3
EPS = 1e-5


# ----------------------------- kernel helpers ------------------------------

def _im2col_3x3(xpad_ref, cols_ref, n, h, w, c):
    """Fill cols_ref[(s,i,j) flat, tap*c:(tap+1)*c] = xpad[s, i+ky, j+kx, :].

    xpad_ref: (n, h+2, w+2, c) f32 (zero border, interior = conv input).
    cols_ref: (n*h*w, KH*KW*c) bf16 (MXU operand staging).
    Only the 3 kx-shifted slabs are loaded; the ky slices are on the cheap
    leading H axis and reused across all three ky taps.  All reshapes keep the
    last dim unchanged (pure vreg re-indexing).
    """
    p = n * h * w
    for kx in range(KW):
        slab = xpad_ref[:, :, kx:kx + w, :]                     # (n, h+2, w, c)
        for ky in range(KH):
            tap = ky * KW + kx
            v = slab[:, ky:ky + h, :, :].reshape(p, c)          # free reindex
            cols_ref[:, tap * c:(tap + 1) * c] = v.astype(jnp.bfloat16)


def _bn_relu(z, gamma, beta):
    """Training-mode BatchNorm (batch stats, biased var, two-pass) + ReLU.

    z: (P, C) f32 with P = N*H*W rows; gamma/beta: (1, C) f32.
    """
    p = z.shape[0]
    mean = jnp.sum(z, axis=0, keepdims=True) * (1.0 / p)
    d = z - mean
    var = jnp.sum(d * d, axis=0, keepdims=True) * (1.0 / p)     # biased variance
    y = d * (lax.rsqrt(var + EPS) * gamma) + beta
    return jnp.maximum(y, 0.0)


# -------------------------------- kernel ------------------------------------

def _down_fused_kernel(x_ref, w1_ref, w2_ref, g1_ref, be1_ref, g2_ref, be2_ref,
                       o_ref,
                       xpad1, cols1, xpad2, cols2,
                       *, n, h2, w2, c_in, c_out, lane_groups):
    """maxpool2x2 -> conv1 -> BN -> ReLU -> conv2 -> BN -> ReLU, one step."""
    p = n * h2 * w2

    # ----------------------- maxpool 2x2 (f32, VPU) -------------------------
    # x_ref: (n, h2, 2, w2, 2*c_in); axis 2 holds the H pool pair, the last
    # axis stacks the W pool pair's channels (contiguous wrapper reshape).
    xv = x_ref[...]
    m = jnp.maximum(xv[:, :, 0], xv[:, :, 1])                   # (n, h2, w2, 2c)
    pooled = jnp.maximum(m[..., :c_in], m[..., c_in:])          # (n, h2, w2, c)

    # ----------------- stage 1: conv3x3 (fat-K im2col) + BN + ReLU ----------
    xpad1[...] = jnp.zeros(xpad1.shape, xpad1.dtype)            # zero border
    xpad1[:, 1:h2 + 1, 1:w2 + 1, :] = pooled
    _im2col_3x3(xpad1, cols1, n, h2, w2, c_in)
    z1 = jnp.dot(cols1[...], w1_ref[...],
                 preferred_element_type=jnp.float32)            # (p, c_out) f32
    y1 = _bn_relu(z1, g1_ref[...], be1_ref[...])

    # ----------------- stage 2: conv3x3 + BN + ReLU --------------------------
    xpad2[...] = jnp.zeros(xpad2.shape, xpad2.dtype)
    xpad2[:, 1:h2 + 1, 1:w2 + 1, :] = y1.reshape(n, h2, w2, c_out)
    _im2col_3x3(xpad2, cols2, n, h2, w2, c_out)
    z2 = jnp.dot(cols2[...], w2_ref[...],
                 preferred_element_type=jnp.float32)            # (p, c_out) f32
    y2 = _bn_relu(z2, g2_ref[...], be2_ref[...])

    # ----------------- lane-dense store --------------------------------------
    if lane_groups == 1:
        # c_out >= 128 (or non-divisible): natural layout is already lane-dense.
        o_ref[...] = y2
    else:
        # Present the output as a (p//lane_groups, lane_groups*c_out=128) slab:
        # dense VMEM output buffer + one dense HBM DMA.  Sublane-aligned slices
        # of y2, lane-offset stores (no in-kernel value reshape of tiled dims).
        rows = p // lane_groups
        for g in range(lane_groups):
            o_ref[:, g * c_out:(g + 1) * c_out] = y2[g * rows:(g + 1) * rows, :]


# -------------------------------- wrapper -----------------------------------

def down_apply(params, x_nchw):
    """Forward of `down(in_ch, out_ch)`; x_nchw: (N, C_in, H, W) float32."""
    n, c_in, h, w = x_nchw.shape
    if h % 2 or w % 2:
        raise ValueError("MaxPool2d(2) path assumes even H and W")
    c_out = params["g1"].shape[-1]
    h2, w2 = h // 2, w // 2
    p = n * h2 * w2

    # Lane-dense output grouping: fold `lane_groups` channel blocks into the
    # 128-wide lane axis when c_out < 128 (toy widths); disable otherwise.
    if c_out < 128 and 128 % c_out == 0 and p % (8 * (128 // c_out)) == 0:
        lane_groups = 128 // c_out
    else:
        lane_groups = 1
    out_rows = p // lane_groups
    out_width = lane_groups * c_out

    # NHWC, then a contiguous reshape that splits the 2x2 pool pairs
    # (H -> (h2, 2), (W, C) -> (w2, 2*C)).  Padding happens inside the kernel.
    x = jnp.transpose(x_nchw, (0, 2, 3, 1))
    xr = x.reshape(n, h2, 2, w2, 2 * c_in)

    kernel = functools.partial(_down_fused_kernel, n=n, h2=h2, w2=w2,
                               c_in=c_in, c_out=c_out, lane_groups=lane_groups)
    vec_spec = pl.BlockSpec((1, c_out), lambda i: (0, 0))

    out = pl.pallas_call(
        kernel,
        grid=(1,),   # single fused step over the whole batch at toy sizes
        in_specs=[
            pl.BlockSpec((n, h2, 2, w2, 2 * c_in), lambda i: (0, 0, 0, 0, 0)),
            pl.BlockSpec((KH * KW * c_in, c_out), lambda i: (0, 0)),   # w1 bf16
            pl.BlockSpec((KH * KW * c_out, c_out), lambda i: (0, 0)),  # w2 bf16
            vec_spec, vec_spec, vec_spec, vec_spec,                    # g/beta x2
        ],
        out_specs=pl.BlockSpec((out_rows, out_width), lambda i: (0, 0)),
        out_shape=jax.ShapeDtypeStruct((out_rows, out_width), jnp.float32),
        scratch_shapes=[
            pltpu.VMEM((n, h2 + 2, w2 + 2, c_in), jnp.float32),    # padded pool
            pltpu.VMEM((p, KH * KW * c_in), jnp.bfloat16),         # im2col st.1
            pltpu.VMEM((n, h2 + 2, w2 + 2, c_out), jnp.float32),   # padded y1
            pltpu.VMEM((p, KH * KW * c_out), jnp.bfloat16),        # im2col st.2
        ],
        compiler_params=pltpu.CompilerParams(
            dimension_semantics=("arbitrary",),
            # Toy-shape budget (actual usage incl. tile padding << 1 MiB).
            # Re-derive per generation at real sizes (v7x: 64 MiB physical).
            vmem_limit_bytes=8 * 1024 * 1024),
    )(xr, params["w1"], params["w2"],
      params["g1"], params["beta1"], params["g2"], params["beta2"])

    # Undo the static lane-grouping permutation (pure XLA reshapes/transposes).
    if lane_groups == 1:
        y2 = out
    else:
        y2 = (out.reshape(out_rows, lane_groups, c_out)
                 .transpose(1, 0, 2).reshape(p, c_out))
    y = y2.reshape(n, h2, w2, c_out)
    return jnp.transpose(y, (0, 3, 1, 2))                       # back to NCHW


# --------------------------- params & reference -----------------------------

def init_down_params(key, c_in, c_out):
    k1, k2, k3, k4 = jax.random.split(key, 4)
    w1_pt = 0.2 * jax.random.normal(k1, (c_out, c_in, KH, KW), jnp.float32)
    w2_pt = 0.2 * jax.random.normal(k2, (c_out, c_out, KH, KW), jnp.float32)

    def to_im2col(w_pt):   # (co, ci, kh, kw) -> (kh*kw*ci, co), bf16 for the MXU
        co, ci = w_pt.shape[0], w_pt.shape[1]
        return jnp.transpose(w_pt, (2, 3, 1, 0)).reshape(
            KH * KW * ci, co).astype(jnp.bfloat16)

    return {
        # PyTorch-layout f32 weights + conv biases: used only by the reference.
        # (The per-channel conv bias cancels exactly in batch-stat BatchNorm,
        #  so the Pallas kernel neither receives nor adds it.)
        "w1_pt": w1_pt, "w2_pt": w2_pt,
        "b1": 0.1 * jax.random.normal(k3, (c_out,), jnp.float32),
        "b2": 0.1 * jax.random.normal(k4, (c_out,), jnp.float32),
        # Kernel weights: im2col layout, bf16 MXU operands.
        "w1": to_im2col(w1_pt), "w2": to_im2col(w2_pt),
        # BatchNorm affine params: PyTorch default init (weight=1, bias=0).
        "g1": jnp.ones((1, c_out), jnp.float32),
        "beta1": jnp.zeros((1, c_out), jnp.float32),
        "g2": jnp.ones((1, c_out), jnp.float32),
        "beta2": jnp.zeros((1, c_out), jnp.float32),
    }


def down_reference(params, x_nchw):
    """Pure-JAX f32 reference (independent formulation) of the PyTorch forward."""
    x = jnp.transpose(x_nchw, (0, 2, 3, 1))
    pooled = lax.reduce_window(x, -jnp.inf, lax.max,
                               window_dimensions=(1, 2, 2, 1),
                               window_strides=(1, 2, 2, 1), padding="VALID")

    def conv_bn_relu(xin, w_pt, bias, gamma, beta):
        z = lax.conv_general_dilated(
            xin, w_pt, window_strides=(1, 1), padding="SAME",
            dimension_numbers=("NHWC", "OIHW", "NHWC"),
            precision=lax.Precision.HIGHEST)
        z = z + bias.reshape(1, 1, 1, -1)      # cancels in BN; kept for fidelity
        mean = jnp.mean(z, axis=(0, 1, 2), keepdims=True)
        var = jnp.mean((z - mean) ** 2, axis=(0, 1, 2), keepdims=True)
        y = (z - mean) * lax.rsqrt(var + EPS)
        y = y * gamma.reshape(1, 1, 1, -1) + beta.reshape(1, 1, 1, -1)
        return jnp.maximum(y, 0.0)

    y1 = conv_bn_relu(pooled, params["w1_pt"], params["b1"],
                      params["g1"], params["beta1"])
    y2 = conv_bn_relu(y1, params["w2_pt"], params["b2"],
                      params["g2"], params["beta2"])
    return jnp.transpose(y2, (0, 3, 1, 2))


# ---------------------------------- main -------------------------------------

if __name__ == "__main__":
    N, C_IN, H, W = 2, 4, 16, 16
    C_OUT = 8

    key = jax.random.PRNGKey(0)
    kx, kp = jax.random.split(key)
    x = jax.random.normal(kx, (N, C_IN, H, W), jnp.float32)
    params = init_down_params(kp, C_IN, C_OUT)

    out = jax.jit(down_apply)(params, x)
    out = jax.block_until_ready(out)
    assert out.shape == (N, C_OUT, H // 2, W // 2), out.shape

    ref = down_reference(params, x)
    err = float(jnp.max(jnp.abs(out - ref)))
    # bf16 MXU operands (f32 accumulation) vs a strictly-f32 reference.
    assert err < 5e-2, f"max abs error vs reference: {err}"

    print("KERNEL_OK")
</pallas_src>

<mosaic_0001>
module attributes {stable_mosaic.version = 11 : i64} {
  func.func @_down_fused_kernel(%arg0: i32, %arg1: memref<2x8x2x8x8xf32, #tpu.memory_space<vmem>>, %arg2: memref<36x8xbf16, #tpu.memory_space<vmem>>, %arg3: memref<72x8xbf16, #tpu.memory_space<vmem>>, %arg4: memref<1x8xf32, #tpu.memory_space<vmem>>, %arg5: memref<1x8xf32, #tpu.memory_space<vmem>>, %arg6: memref<1x8xf32, #tpu.memory_space<vmem>>, %arg7: memref<1x8xf32, #tpu.memory_space<vmem>>, %arg8: memref<8x128xf32, #tpu.memory_space<vmem>>, %arg9: memref<2x10x10x4xf32, #tpu.memory_space<vmem>>, %arg10: memref<128x36xbf16, #tpu.memory_space<vmem>>, %arg11: memref<2x10x10x8xf32, #tpu.memory_space<vmem>>, %arg12: memref<128x72xbf16, #tpu.memory_space<vmem>>) attributes {dimension_semantics = [#tpu.dimension_semantics<arbitrary>], iteration_bounds = array<i64: 1>, scalar_prefetch = 0 : i64, scratch_operands = 4 : i64, tpu.core_type = #tpu.core_type<tc>, window_params = [{pipeline_mode = #tpu.pipeline_mode<synchronous>, transform_indices = @transform_0, window_bounds = array<i64: 2, 8, 2, 8, 8>}, {pipeline_mode = #tpu.pipeline_mode<synchronous>, transform_indices = @transform_1, window_bounds = array<i64: 36, 8>}, {pipeline_mode = #tpu.pipeline_mode<synchronous>, transform_indices = @transform_2, window_bounds = array<i64: 72, 8>}, {pipeline_mode = #tpu.pipeline_mode<synchronous>, transform_indices = @transform_3, window_bounds = array<i64: 1, 8>}, {pipeline_mode = #tpu.pipeline_mode<synchronous>, transform_indices = @transform_4, window_bounds = array<i64: 1, 8>}, {pipeline_mode = #tpu.pipeline_mode<synchronous>, transform_indices = @transform_5, window_bounds = array<i64: 1, 8>}, {pipeline_mode = #tpu.pipeline_mode<synchronous>, transform_indices = @transform_6, window_bounds = array<i64: 1, 8>}, {pipeline_mode = #tpu.pipeline_mode<synchronous>, transform_indices = @transform_7, window_bounds = array<i64: 8, 128>}]} {
    %c0 = arith.constant 0 : index
    %c0_0 = arith.constant 0 : index
    %c0_1 = arith.constant 0 : index
    %c0_2 = arith.constant 0 : index
    %c0_3 = arith.constant 0 : index
    %0 = vector.load %arg1[%c0, %c0_0, %c0_1, %c0_2, %c0_3] : memref<2x8x2x8x8xf32, #tpu.memory_space<vmem>>, vector<2x8x2x8x8xf32>
    %1 = vector.extract_strided_slice %0 {offsets = [0, 0, 0, 0, 0], sizes = [2, 8, 1, 8, 8], strides = [1, 1, 1, 1, 1]} : vector<2x8x2x8x8xf32> to vector<2x8x1x8x8xf32>
    %2 = vector.shape_cast %1 : vector<2x8x1x8x8xf32> to vector<2x8x8x8xf32>
    %3 = vector.extract_strided_slice %0 {offsets = [0, 0, 1, 0, 0], sizes = [2, 8, 1, 8, 8], strides = [1, 1, 1, 1, 1]} : vector<2x8x2x8x8xf32> to vector<2x8x1x8x8xf32>
    %4 = vector.shape_cast %3 : vector<2x8x1x8x8xf32> to vector<2x8x8x8xf32>
    %5 = arith.maximumf %2, %4 : vector<2x8x8x8xf32>
    %6 = vector.extract_strided_slice %5 {offsets = [0, 0, 0, 0], sizes = [2, 8, 8, 4], strides = [1, 1, 1, 1]} : vector<2x8x8x8xf32> to vector<2x8x8x4xf32>
    %7 = vector.extract_strided_slice %5 {offsets = [0, 0, 0, 4], sizes = [2, 8, 8, 4], strides = [1, 1, 1, 1]} : vector<2x8x8x8xf32> to vector<2x8x8x4xf32>
    %8 = arith.maximumf %6, %7 : vector<2x8x8x4xf32>
    %cst = arith.constant 0.000000e+00 : f32
    %9 = vector.broadcast %cst : f32 to vector<2x10x10x4xf32>
    %c0_4 = arith.constant 0 : index
    %c0_5 = arith.constant 0 : index
    %c0_6 = arith.constant 0 : index
    %c0_7 = arith.constant 0 : index
    %10 = vector.load %arg9[%c0_4, %c0_5, %c0_6, %c0_7] : memref<2x10x10x4xf32, #tpu.memory_space<vmem>>, vector<2x10x10x4xf32>
    tpu.vector_store %arg9[%c0_4, %c0_5, %c0_6, %c0_7], %9 {strides = array<i32>} : memref<2x10x10x4xf32, #tpu.memory_space<vmem>>, vector<2x10x10x4xf32>,
    %c0_8 = arith.constant 0 : index
    %c1 = arith.constant 1 : index
    %c1_9 = arith.constant 1 : index
    %c0_10 = arith.constant 0 : index
    %11 = vector.load %arg9[%c0_8, %c1, %c1_9, %c0_10] : memref<2x10x10x4xf32, #tpu.memory_space<vmem>>, vector<2x8x8x4xf32>
    tpu.vector_store %arg9[%c0_8, %c1, %c1_9, %c0_10], %8 {strides = array<i32>} : memref<2x10x10x4xf32, #tpu.memory_space<vmem>>, vector<2x8x8x4xf32>,
    %c0_11 = arith.constant 0 : index
    %c0_12 = arith.constant 0 : index
    %c0_13 = arith.constant 0 : index
    %c0_14 = arith.constant 0 : index
    %12 = vector.load %arg9[%c0_11, %c0_12, %c0_13, %c0_14] : memref<2x10x10x4xf32, #tpu.memory_space<vmem>>, vector<2x10x8x4xf32>
    %13 = vector.extract_strided_slice %12 {offsets = [0, 0, 0, 0], sizes = [2, 8, 8, 4], strides = [1, 1, 1, 1]} : vector<2x10x8x4xf32> to vector<2x8x8x4xf32>
    %14 = vector.shape_cast %13 : vector<2x8x8x4xf32> to vector<128x4xf32>
    %15 = arith.truncf %14 : vector<128x4xf32> to vector<128x4xbf16>
    %c0_15 = arith.constant 0 : index
    %c0_16 = arith.constant 0 : index
    %16 = vector.load %arg10[%c0_15, %c0_16] : memref<128x36xbf16, #tpu.memory_space<vmem>>, vector<128x4xbf16>
    tpu.vector_store %arg10[%c0_15, %c0_16], %15 {strides = array<i32>} : memref<128x36xbf16, #tpu.memory_space<vmem>>, vector<128x4xbf16>,
    %17 = vector.extract_strided_slice %12 {offsets = [0, 1, 0, 0], sizes = [2, 8, 8, 4], strides = [1, 1, 1, 1]} : vector<2x10x8x4xf32> to vector<2x8x8x4xf32>
    %18 = vector.shape_cast %17 : vector<2x8x8x4xf32> to vector<128x4xf32>
    %19 = arith.truncf %18 : vector<128x4xf32> to vector<128x4xbf16>
    %c0_17 = arith.constant 0 : index
    %c12 = arith.constant 12 : index
    %20 = vector.load %arg10[%c0_17, %c12] : memref<128x36xbf16, #tpu.memory_space<vmem>>, vector<128x4xbf16>
    tpu.vector_store %arg10[%c0_17, %c12], %19 {strides = array<i32>} : memref<128x36xbf16, #tpu.memory_space<vmem>>, vector<128x4xbf16>,
    %21 = vector.extract_strided_slice %12 {offsets = [0, 2, 0, 0], sizes = [2, 8, 8, 4], strides = [1, 1, 1, 1]} : vector<2x10x8x4xf32> to vector<2x8x8x4xf32>
    %22 = vector.shape_cast %21 : vector<2x8x8x4xf32> to vector<128x4xf32>
    %23 = arith.truncf %22 : vector<128x4xf32> to vector<128x4xbf16>
    %c0_18 = arith.constant 0 : index
    %c24 = arith.constant 24 : index
    %24 = vector.load %arg10[%c0_18, %c24] : memref<128x36xbf16, #tpu.memory_space<vmem>>, vector<128x4xbf16>
    tpu.vector_store %arg10[%c0_18, %c24], %23 {strides = array<i32>} : memref<128x36xbf16, #tpu.memory_space<vmem>>, vector<128x4xbf16>,
    %c0_19 = arith.constant 0 : index
    %c0_20 = arith.constant 0 : index
    %c1_21 = arith.constant 1 : index
    %c0_22 = arith.constant 0 : index
    %25 = vector.load %arg9[%c0_19, %c0_20, %c1_21, %c0_22] : memref<2x10x10x4xf32, #tpu.memory_space<vmem>>, vector<2x10x8x4xf32>
    %26 = vector.extract_strided_slice %25 {offsets = [0, 0, 0, 0], sizes = [2, 8, 8, 4], strides = [1, 1, 1, 1]} : vector<2x10x8x4xf32> to vector<2x8x8x4xf32>
    %27 = vector.shape_cast %26 : vector<2x8x8x4xf32> to vector<128x4xf32>
    %28 = arith.truncf %27 : vector<128x4xf32> to vector<128x4xbf16>
    %c0_23 = arith.constant 0 : index
    %c4 = arith.constant 4 : index
    %29 = vector.load %arg10[%c0_23, %c4] : memref<128x36xbf16, #tpu.memory_space<vmem>>, vector<128x4xbf16>
    tpu.vector_store %arg10[%c0_23, %c4], %28 {strides = array<i32>} : memref<128x36xbf16, #tpu.memory_space<vmem>>, vector<128x4xbf16>,
    %30 = vector.extract_strided_slice %25 {offsets = [0, 1, 0, 0], sizes = [2, 8, 8, 4], strides = [1, 1, 1, 1]} : vector<2x10x8x4xf32> to vector<2x8x8x4xf32>
    %31 = vector.shape_cast %30 : vector<2x8x8x4xf32> to vector<128x4xf32>
    %32 = arith.truncf %31 : vector<128x4xf32> to vector<128x4xbf16>
    %c0_24 = arith.constant 0 : index
    %c16 = arith.constant 16 : index
    %33 = vector.load %arg10[%c0_24, %c16] : memref<128x36xbf16, #tpu.memory_space<vmem>>, vector<128x4xbf16>
    tpu.vector_store %arg10[%c0_24, %c16], %32 {strides = array<i32>} : memref<128x36xbf16, #tpu.memory_space<vmem>>, vector<128x4xbf16>,
    %34 = vector.extract_strided_slice %25 {offsets = [0, 2, 0, 0], sizes = [2, 8, 8, 4], strides = [1, 1, 1, 1]} : vector<2x10x8x4xf32> to vector<2x8x8x4xf32>
    %35 = vector.shape_cast %34 : vector<2x8x8x4xf32> to vector<128x4xf32>
    %36 = arith.truncf %35 : vector<128x4xf32> to vector<128x4xbf16>
    %c0_25 = arith.constant 0 : index
    %c28 = arith.constant 28 : index
    %37 = vector.load %arg10[%c0_25, %c28] : memref<128x36xbf16, #tpu.memory_space<vmem>>, vector<128x4xbf16>
    tpu.vector_store %arg10[%c0_25, %c28], %36 {strides = array<i32>} : memref<128x36xbf16, #tpu.memory_space<vmem>>, vector<128x4xbf16>,
    %c0_26 = arith.constant 0 : index
    %c0_27 = arith.constant 0 : index
    %c2 = arith.constant 2 : index
    %c0_28 = arith.constant 0 : index
    %38 = vector.load %arg9[%c0_26, %c0_27, %c2, %c0_28] : memref<2x10x10x4xf32, #tpu.memory_space<vmem>>, vector<2x10x8x4xf32>
    %39 = vector.extract_strided_slice %38 {offsets = [0, 0, 0, 0], sizes = [2, 8, 8, 4], strides = [1, 1, 1, 1]} : vector<2x10x8x4xf32> to vector<2x8x8x4xf32>
    %40 = vector.shape_cast %39 : vector<2x8x8x4xf32> to vector<128x4xf32>
    %41 = arith.truncf %40 : vector<128x4xf32> to vector<128x4xbf16>
    %c0_29 = arith.constant 0 : index
    %c8 = arith.constant 8 : index
    %42 = vector.load %arg10[%c0_29, %c8] : memref<128x36xbf16, #tpu.memory_space<vmem>>, vector<128x4xbf16>
    tpu.vector_store %arg10[%c0_29, %c8], %41 {strides = array<i32>} : memref<128x36xbf16, #tpu.memory_space<vmem>>, vector<128x4xbf16>,
    %43 = vector.extract_strided_slice %38 {offsets = [0, 1, 0, 0], sizes = [2, 8, 8, 4], strides = [1, 1, 1, 1]} : vector<2x10x8x4xf32> to vector<2x8x8x4xf32>
    %44 = vector.shape_cast %43 : vector<2x8x8x4xf32> to vector<128x4xf32>
    %45 = arith.truncf %44 : vector<128x4xf32> to vector<128x4xbf16>
    %c0_30 = arith.constant 0 : index
    %c20 = arith.constant 20 : index
    %46 = vector.load %arg10[%c0_30, %c20] : memref<128x36xbf16, #tpu.memory_space<vmem>>, vector<128x4xbf16>
    tpu.vector_store %arg10[%c0_30, %c20], %45 {strides = array<i32>} : memref<128x36xbf16, #tpu.memory_space<vmem>>, vector<128x4xbf16>,
    %47 = vector.extract_strided_slice %38 {offsets = [0, 2, 0, 0], sizes = [2, 8, 8, 4], strides = [1, 1, 1, 1]} : vector<2x10x8x4xf32> to vector<2x8x8x4xf32>
    %48 = vector.shape_cast %47 : vector<2x8x8x4xf32> to vector<128x4xf32>
    %49 = arith.truncf %48 : vector<128x4xf32> to vector<128x4xbf16>
    %c0_31 = arith.constant 0 : index
    %c32 = arith.constant 32 : index
    %50 = vector.load %arg10[%c0_31, %c32] : memref<128x36xbf16, #tpu.memory_space<vmem>>, vector<128x4xbf16>
    tpu.vector_store %arg10[%c0_31, %c32], %49 {strides = array<i32>} : memref<128x36xbf16, #tpu.memory_space<vmem>>, vector<128x4xbf16>,
    %c0_32 = arith.constant 0 : index
    %c0_33 = arith.constant 0 : index
    %51 = vector.load %arg10[%c0_32, %c0_33] : memref<128x36xbf16, #tpu.memory_space<vmem>>, vector<128x36xbf16>
    %c0_34 = arith.constant 0 : index
    %c0_35 = arith.constant 0 : index
    %52 = vector.load %arg2[%c0_34, %c0_35] : memref<36x8xbf16, #tpu.memory_space<vmem>>, vector<36x8xbf16>
    %cst_36 = arith.constant dense<0.000000e+00> : vector<128x8xf32>
    %53 = tpu.matmul %51, %52, %cst_36 {dimension_numbers = #tpu.dot_dimension_numbers<[1], [0], [0], [1], [0, 0, 1, 1], [], []>} : vector<128x36xbf16>, vector<36x8xbf16>, vector<128x8xf32> -> vector<128x8xf32>
    %c0_37 = arith.constant 0 : index
    %c0_38 = arith.constant 0 : index
    %54 = vector.load %arg4[%c0_37, %c0_38] : memref<1x8xf32, #tpu.memory_space<vmem>>, vector<1x8xf32>
    %c0_39 = arith.constant 0 : index
    %c0_40 = arith.constant 0 : index
    %55 = vector.load %arg5[%c0_39, %c0_40] : memref<1x8xf32, #tpu.memory_space<vmem>>, vector<1x8xf32>
    %cst_41 = arith.constant dense<0.000000e+00> : vector<8xf32>
    %56 = vector.multi_reduction <add>, %53, %cst_41 [0] : vector<128x8xf32> to vector<8xf32>
    %57 = vector.shape_cast %56 : vector<8xf32> to vector<1x8xf32>
    %cst_42 = arith.constant 7.812500e-03 : f32
    %58 = vector.broadcast %cst_42 : f32 to vector<1x8xf32>
    %59 = arith.mulf %57, %58 : vector<1x8xf32>
    %60 = vector.broadcast %59 : vector<1x8xf32> to vector<128x8xf32>
    %61 = arith.subf %53, %60 : vector<128x8xf32>
    %62 = arith.mulf %61, %61 : vector<128x8xf32>
    %cst_43 = arith.constant dense<0.000000e+00> : vector<8xf32>
    %63 = vector.multi_reduction <add>, %62, %cst_43 [0] : vector<128x8xf32> to vector<8xf32>
    %64 = vector.shape_cast %63 : vector<8xf32> to vector<1x8xf32>
    %cst_44 = arith.constant 7.812500e-03 : f32
    %65 = vector.broadcast %cst_44 : f32 to vector<1x8xf32>
    %66 = arith.mulf %64, %65 : vector<1x8xf32>
    %cst_45 = arith.constant 9.99999974E-6 : f32
    %67 = vector.broadcast %cst_45 : f32 to vector<1x8xf32>
    %68 = arith.addf %66, %67 : vector<1x8xf32>
    %69 = math.rsqrt %68 : vector<1x8xf32>
    %70 = arith.mulf %69, %54 : vector<1x8xf32>
    %71 = vector.broadcast %70 : vector<1x8xf32> to vector<128x8xf32>
    %72 = arith.mulf %61, %71 : vector<128x8xf32>
    %73 = vector.broadcast %55 : vector<1x8xf32> to vector<128x8xf32>
    %74 = arith.addf %72, %73 : vector<128x8xf32>
    %cst_46 = arith.constant 0.000000e+00 : f32
    %75 = vector.broadcast %cst_46 : f32 to vector<128x8xf32>
    %76 = arith.maximumf %74, %75 : vector<128x8xf32>
    %cst_47 = arith.constant 0.000000e+00 : f32
    %77 = vector.broadcast %cst_47 : f32 to vector<2x10x10x8xf32>
    %c0_48 = arith.constant 0 : index
    %c0_49 = arith.constant 0 : index
    %c0_50 = arith.constant 0 : index
    %c0_51 = arith.constant 0 : index
    %78 = vector.load %arg11[%c0_48, %c0_49, %c0_50, %c0_51] : memref<2x10x10x8xf32, #tpu.memory_space<vmem>>, vector<2x10x10x8xf32>
    tpu.vector_store %arg11[%c0_48, %c0_49, %c0_50, %c0_51], %77 {strides = array<i32>} : memref<2x10x10x8xf32, #tpu.memory_space<vmem>>, vector<2x10x10x8xf32>,
    %79 = vector.shape_cast %76 : vector<128x8xf32> to vector<2x8x8x8xf32>
    %c0_52 = arith.constant 0 : index
    %c1_53 = arith.constant 1 : index
    %c1_54 = arith.constant 1 : index
    %c0_55 = arith.constant 0 : index
    %80 = vector.load %arg11[%c0_52, %c1_53, %c1_54, %c0_55] : memref<2x10x10x8xf32, #tpu.memory_space<vmem>>, vector<2x8x8x8xf32>
    tpu.vector_store %arg11[%c0_52, %c1_53, %c1_54, %c0_55], %79 {strides = array<i32>} : memref<2x10x10x8xf32, #tpu.memory_space<vmem>>, vector<2x8x8x8xf32>,
    %c0_56 = arith.constant 0 : index
    %c0_57 = arith.constant 0 : index
    %c0_58 = arith.constant 0 : index
    %c0_59 = arith.constant 0 : index
    %81 = vector.load %arg11[%c0_56, %c0_57, %c0_58, %c0_59] : memref<2x10x10x8xf32, #tpu.memory_space<vmem>>, vector<2x10x8x8xf32>
    %82 = vector.extract_strided_slice %81 {offsets = [0, 0, 0, 0], sizes = [2, 8, 8, 8], strides = [1, 1, 1, 1]} : vector<2x10x8x8xf32> to vector<2x8x8x8xf32>
    %83 = vector.shape_cast %82 : vector<2x8x8x8xf32> to vector<128x8xf32>
    %84 = arith.truncf %83 : vector<128x8xf32> to vector<128x8xbf16>
    %c0_60 = arith.constant 0 : index
    %c0_61 = arith.constant 0 : index
    %85 = vector.load %arg12[%c0_60, %c0_61] : memref<128x72xbf16, #tpu.memory_space<vmem>>, vector<128x8xbf16>
    tpu.vector_store %arg12[%c0_60, %c0_61], %84 {strides = array<i32>} : memref<128x72xbf16, #tpu.memory_space<vmem>>, vector<128x8xbf16>,
    %86 = vector.extract_strided_slice %81 {offsets = [0, 1, 0, 0], sizes = [2, 8, 8, 8], strides = [1, 1, 1, 1]} : vector<2x10x8x8xf32> to vector<2x8x8x8xf32>
    %87 = vector.shape_cast %86 : vector<2x8x8x8xf32> to vector<128x8xf32>
    %88 = arith.truncf %87 : vector<128x8xf32> to vector<128x8xbf16>
    %c0_62 = arith.constant 0 : index
    %c24_63 = arith.constant 24 : index
    %89 = vector.load %arg12[%c0_62, %c24_63] : memref<128x72xbf16, #tpu.memory_space<vmem>>, vector<128x8xbf16>
    tpu.vector_store %arg12[%c0_62, %c24_63], %88 {strides = array<i32>} : memref<128x72xbf16, #tpu.memory_space<vmem>>, vector<128x8xbf16>,
    %90 = vector.extract_strided_slice %81 {offsets = [0, 2, 0, 0], sizes = [2, 8, 8, 8], strides = [1, 1, 1, 1]} : vector<2x10x8x8xf32> to vector<2x8x8x8xf32>
    %91 = vector.shape_cast %90 : vector<2x8x8x8xf32> to vector<128x8xf32>
    %92 = arith.truncf %91 : vector<128x8xf32> to vector<128x8xbf16>
    %c0_64 = arith.constant 0 : index
    %c48 = arith.constant 48 : index
    %93 = vector.load %arg12[%c0_64, %c48] : memref<128x72xbf16, #tpu.memory_space<vmem>>, vector<128x8xbf16>
    tpu.vector_store %arg12[%c0_64, %c48], %92 {strides = array<i32>} : memref<128x72xbf16, #tpu.memory_space<vmem>>, vector<128x8xbf16>,
    %c0_65 = arith.constant 0 : index
    %c0_66 = arith.constant 0 : index
    %c1_67 = arith.constant 1 : index
    %c0_68 = arith.constant 0 : index
    %94 = vector.load %arg11[%c0_65, %c0_66, %c1_67, %c0_68] : memref<2x10x10x8xf32, #tpu.memory_space<vmem>>, vector<2x10x8x8xf32>
    %95 = vector.extract_strided_slice %94 {offsets = [0, 0, 0, 0], sizes = [2, 8, 8, 8], strides = [1, 1, 1, 1]} : vector<2x10x8x8xf32> to vector<2x8x8x8xf32>
    %96 = vector.shape_cast %95 : vector<2x8x8x8xf32> to vector<128x8xf32>
    %97 = arith.truncf %96 : vector<128x8xf32> to vector<128x8xbf16>
    %c0_69 = arith.constant 0 : index
    %c8_70 = arith.constant 8 : index
    %98 = vector.load %arg12[%c0_69, %c8_70] : memref<128x72xbf16, #tpu.memory_space<vmem>>, vector<128x8xbf16>
    tpu.vector_store %arg12[%c0_69, %c8_70], %97 {strides = array<i32>} : memref<128x72xbf16, #tpu.memory_space<vmem>>, vector<128x8xbf16>,
    %99 = vector.extract_strided_slice %94 {offsets = [0, 1, 0, 0], sizes = [2, 8, 8, 8], strides = [1, 1, 1, 1]} : vector<2x10x8x8xf32> to vector<2x8x8x8xf32>
    %100 = vector.shape_cast %99 : vector<2x8x8x8xf32> to vector<128x8xf32>
    %101 = arith.truncf %100 : vector<128x8xf32> to vector<128x8xbf16>
    %c0_71 = arith.constant 0 : index
    %c32_72 = arith.constant 32 : index
    %102 = vector.load %arg12[%c0_71, %c32_72] : memref<128x72xbf16, #tpu.memory_space<vmem>>, vector<128x8xbf16>
    tpu.vector_store %arg12[%c0_71, %c32_72], %101 {strides = array<i32>} : memref<128x72xbf16, #tpu.memory_space<vmem>>, vector<128x8xbf16>,
    %103 = vector.extract_strided_slice %94 {offsets = [0, 2, 0, 0], sizes = [2, 8, 8, 8], strides = [1, 1, 1, 1]} : vector<2x10x8x8xf32> to vector<2x8x8x8xf32>
    %104 = vector.shape_cast %103 : vector<2x8x8x8xf32> to vector<128x8xf32>
    %105 = arith.truncf %104 : vector<128x8xf32> to vector<128x8xbf16>
    %c0_73 = arith.constant 0 : index
    %c56 = arith.constant 56 : index
    %106 = vector.load %arg12[%c0_73, %c56] : memref<128x72xbf16, #tpu.memory_space<vmem>>, vector<128x8xbf16>
    tpu.vector_store %arg12[%c0_73, %c56], %105 {strides = array<i32>} : memref<128x72xbf16, #tpu.memory_space<vmem>>, vector<128x8xbf16>,
    %c0_74 = arith.constant 0 : index
    %c0_75 = arith.constant 0 : index
    %c2_76 = arith.constant 2 : index
    %c0_77 = arith.constant 0 : index
    %107 = vector.load %arg11[%c0_74, %c0_75, %c2_76, %c0_77] : memref<2x10x10x8xf32, #tpu.memory_space<vmem>>, vector<2x10x8x8xf32>
    %108 = vector.extract_strided_slice %107 {offsets = [0, 0, 0, 0], sizes = [2, 8, 8, 8], strides = [1, 1, 1, 1]} : vector<2x10x8x8xf32> to vector<2x8x8x8xf32>
    %109 = vector.shape_cast %108 : vector<2x8x8x8xf32> to vector<128x8xf32>
    %110 = arith.truncf %109 : vector<128x8xf32> to vector<128x8xbf16>
    %c0_78 = arith.constant 0 : index
    %c16_79 = arith.constant 16 : index
    %111 = vector.load %arg12[%c0_78, %c16_79] : memref<128x72xbf16, #tpu.memory_space<vmem>>, vector<128x8xbf16>
    tpu.vector_store %arg12[%c0_78, %c16_79], %110 {strides = array<i32>} : memref<128x72xbf16, #tpu.memory_space<vmem>>, vector<128x8xbf16>,
    %112 = vector.extract_strided_slice %107 {offsets = [0, 1, 0, 0], sizes = [2, 8, 8, 8], strides = [1, 1, 1, 1]} : vector<2x10x8x8xf32> to vector<2x8x8x8xf32>
    %113 = vector.shape_cast %112 : vector<2x8x8x8xf32> to vector<128x8xf32>
    %114 = arith.truncf %113 : vector<128x8xf32> to vector<128x8xbf16>
    %c0_80 = arith.constant 0 : index
    %c40 = arith.constant 40 : index
    %115 = vector.load %arg12[%c0_80, %c40] : memref<128x72xbf16, #tpu.memory_space<vmem>>, vector<128x8xbf16>
    tpu.vector_store %arg12[%c0_80, %c40], %114 {strides = array<i32>} : memref<128x72xbf16, #tpu.memory_space<vmem>>, vector<128x8xbf16>,
    %116 = vector.extract_strided_slice %107 {offsets = [0, 2, 0, 0], sizes = [2, 8, 8, 8], strides = [1, 1, 1, 1]} : vector<2x10x8x8xf32> to vector<2x8x8x8xf32>
    %117 = vector.shape_cast %116 : vector<2x8x8x8xf32> to vector<128x8xf32>
    %118 = arith.truncf %117 : vector<128x8xf32> to vector<128x8xbf16>
    %c0_81 = arith.constant 0 : index
    %c64 = arith.constant 64 : index
    %119 = vector.load %arg12[%c0_81, %c64] : memref<128x72xbf16, #tpu.memory_space<vmem>>, vector<128x8xbf16>
    tpu.vector_store %arg12[%c0_81, %c64], %118 {strides = array<i32>} : memref<128x72xbf16, #tpu.memory_space<vmem>>, vector<128x8xbf16>,
    %c0_82 = arith.constant 0 : index
    %c0_83 = arith.constant 0 : index
    %120 = vector.load %arg12[%c0_82, %c0_83] : memref<128x72xbf16, #tpu.memory_space<vmem>>, vector<128x72xbf16>
    %c0_84 = arith.constant 0 : index
    %c0_85 = arith.constant 0 : index
    %121 = vector.load %arg3[%c0_84, %c0_85] : memref<72x8xbf16, #tpu.memory_space<vmem>>, vector<72x8xbf16>
    %cst_86 = arith.constant dense<0.000000e+00> : vector<128x8xf32>
    %122 = tpu.matmul %120, %121, %cst_86 {dimension_numbers = #tpu.dot_dimension_numbers<[1], [0], [0], [1], [0, 0, 1, 1], [], []>} : vector<128x72xbf16>, vector<72x8xbf16>, vector<128x8xf32> -> vector<128x8xf32>
    %c0_87 = arith.constant 0 : index
    %c0_88 = arith.constant 0 : index
    %123 = vector.load %arg6[%c0_87, %c0_88] : memref<1x8xf32, #tpu.memory_space<vmem>>, vector<1x8xf32>
    %c0_89 = arith.constant 0 : index
    %c0_90 = arith.constant 0 : index
    %124 = vector.load %arg7[%c0_89, %c0_90] : memref<1x8xf32, #tpu.memory_space<vmem>>, vector<1x8xf32>
    %cst_91 = arith.constant dense<0.000000e+00> : vector<8xf32>
    %125 = vector.multi_reduction <add>, %122, %cst_91 [0] : vector<128x8xf32> to vector<8xf32>
    %126 = vector.shape_cast %125 : vector<8xf32> to vector<1x8xf32>
    %cst_92 = arith.constant 7.812500e-03 : f32
    %127 = vector.broadcast %cst_92 : f32 to vector<1x8xf32>
    %128 = arith.mulf %126, %127 : vector<1x8xf32>
    %129 = vector.broadcast %128 : vector<1x8xf32> to vector<128x8xf32>
    %130 = arith.subf %122, %129 : vector<128x8xf32>
    %131 = arith.mulf %130, %130 : vector<128x8xf32>
    %cst_93 = arith.constant dense<0.000000e+00> : vector<8xf32>
    %132 = vector.multi_reduction <add>, %131, %cst_93 [0] : vector<128x8xf32> to vector<8xf32>
    %133 = vector.shape_cast %132 : vector<8xf32> to vector<1x8xf32>
    %cst_94 = arith.constant 7.812500e-03 : f32
    %134 = vector.broadcast %cst_94 : f32 to vector<1x8xf32>
    %135 = arith.mulf %133, %134 : vector<1x8xf32>
    %cst_95 = arith.constant 9.99999974E-6 : f32
    %136 = vector.broadcast %cst_95 : f32 to vector<1x8xf32>
    %137 = arith.addf %135, %136 : vector<1x8xf32>
    %138 = math.rsqrt %137 : vector<1x8xf32>
    %139 = arith.mulf %138, %123 : vector<1x8xf32>
    %140 = vector.broadcast %139 : vector<1x8xf32> to vector<128x8xf32>
    %141 = arith.mulf %130, %140 : vector<128x8xf32>
    %142 = vector.broadcast %124 : vector<1x8xf32> to vector<128x8xf32>
    %143 = arith.addf %141, %142 : vector<128x8xf32>
    %cst_96 = arith.constant 0.000000e+00 : f32
    %144 = vector.broadcast %cst_96 : f32 to vector<128x8xf32>
    %145 = arith.maximumf %143, %144 : vector<128x8xf32>
    %146 = vector.extract_strided_slice %145 {offsets = [0, 0], sizes = [8, 8], strides = [1, 1]} : vector<128x8xf32> to vector<8x8xf32>
    %c0_97 = arith.constant 0 : index
    %c0_98 = arith.constant 0 : index
    %147 = vector.load %arg8[%c0_97, %c0_98] : memref<8x128xf32, #tpu.memory_space<vmem>>, vector<8x8xf32>
    tpu.vector_store %arg8[%c0_97, %c0_98], %146 {strides = array<i32>} : memref<8x128xf32, #tpu.memory_space<vmem>>, vector<8x8xf32>,
    %148 = vector.extract_strided_slice %145 {offsets = [8, 0], sizes = [8, 8], strides = [1, 1]} : vector<128x8xf32> to vector<8x8xf32>
    %c0_99 = arith.constant 0 : index
    %c8_100 = arith.constant 8 : index
    %149 = vector.load %arg8[%c0_99, %c8_100] : memref<8x128xf32, #tpu.memory_space<vmem>>, vector<8x8xf32>
    tpu.vector_store %arg8[%c0_99, %c8_100], %148 {strides = array<i32>} : memref<8x128xf32, #tpu.memory_space<vmem>>, vector<8x8xf32>,
    %150 = vector.extract_strided_slice %145 {offsets = [16, 0], sizes = [8, 8], strides = [1, 1]} : vector<128x8xf32> to vector<8x8xf32>
    %c0_101 = arith.constant 0 : index
    %c16_102 = arith.constant 16 : index
    %151 = vector.load %arg8[%c0_101, %c16_102] : memref<8x128xf32, #tpu.memory_space<vmem>>, vector<8x8xf32>
    tpu.vector_store %arg8[%c0_101, %c16_102], %150 {strides = array<i32>} : memref<8x128xf32, #tpu.memory_space<vmem>>, vector<8x8xf32>,
    %152 = vector.extract_strided_slice %145 {offsets = [24, 0], sizes = [8, 8], strides = [1, 1]} : vector<128x8xf32> to vector<8x8xf32>
    %c0_103 = arith.constant 0 : index
    %c24_104 = arith.constant 24 : index
    %153 = vector.load %arg8[%c0_103, %c24_104] : memref<8x128xf32, #tpu.memory_space<vmem>>, vector<8x8xf32>
    tpu.vector_store %arg8[%c0_103, %c24_104], %152 {strides = array<i32>} : memref<8x128xf32, #tpu.memory_space<vmem>>, vector<8x8xf32>,
    %154 = vector.extract_strided_slice %145 {offsets = [32, 0], sizes = [8, 8], strides = [1, 1]} : vector<128x8xf32> to vector<8x8xf32>
    %c0_105 = arith.constant 0 : index
    %c32_106 = arith.constant 32 : index
    %155 = vector.load %arg8[%c0_105, %c32_106] : memref<8x128xf32, #tpu.memory_space<vmem>>, vector<8x8xf32>
    tpu.vector_store %arg8[%c0_105, %c32_106], %154 {strides = array<i32>} : memref<8x128xf32, #tpu.memory_space<vmem>>, vector<8x8xf32>,
    %156 = vector.extract_strided_slice %145 {offsets = [40, 0], sizes = [8, 8], strides = [1, 1]} : vector<128x8xf32> to vector<8x8xf32>
    %c0_107 = arith.constant 0 : index
    %c40_108 = arith.constant 40 : index
    %157 = vector.load %arg8[%c0_107, %c40_108] : memref<8x128xf32, #tpu.memory_space<vmem>>, vector<8x8xf32>
    tpu.vector_store %arg8[%c0_107, %c40_108], %156 {strides = array<i32>} : memref<8x128xf32, #tpu.memory_space<vmem>>, vector<8x8xf32>,
    %158 = vector.extract_strided_slice %145 {offsets = [48, 0], sizes = [8, 8], strides = [1, 1]} : vector<128x8xf32> to vector<8x8xf32>
    %c0_109 = arith.constant 0 : index
    %c48_110 = arith.constant 48 : index
    %159 = vector.load %arg8[%c0_109, %c48_110] : memref<8x128xf32, #tpu.memory_space<vmem>>, vector<8x8xf32>
    tpu.vector_store %arg8[%c0_109, %c48_110], %158 {strides = array<i32>} : memref<8x128xf32, #tpu.memory_space<vmem>>, vector<8x8xf32>,
    %160 = vector.extract_strided_slice %145 {offsets = [56, 0], sizes = [8, 8], strides = [1, 1]} : vector<128x8xf32> to vector<8x8xf32>
    %c0_111 = arith.constant 0 : index
    %c56_112 = arith.constant 56 : index
    %161 = vector.load %arg8[%c0_111, %c56_112] : memref<8x128xf32, #tpu.memory_space<vmem>>, vector<8x8xf32>
    tpu.vector_store %arg8[%c0_111, %c56_112], %160 {strides = array<i32>} : memref<8x128xf32, #tpu.memory_space<vmem>>, vector<8x8xf32>,
    %162 = vector.extract_strided_slice %145 {offsets = [64, 0], sizes = [8, 8], strides = [1, 1]} : vector<128x8xf32> to vector<8x8xf32>
    %c0_113 = arith.constant 0 : index
    %c64_114 = arith.constant 64 : index
    %163 = vector.load %arg8[%c0_113, %c64_114] : memref<8x128xf32, #tpu.memory_space<vmem>>, vector<8x8xf32>
    tpu.vector_store %arg8[%c0_113, %c64_114], %162 {strides = array<i32>} : memref<8x128xf32, #tpu.memory_space<vmem>>, vector<8x8xf32>,
    %164 = vector.extract_strided_slice %145 {offsets = [72, 0], sizes = [8, 8], strides = [1, 1]} : vector<128x8xf32> to vector<8x8xf32>
    %c0_115 = arith.constant 0 : index
    %c72 = arith.constant 72 : index
    %165 = vector.load %arg8[%c0_115, %c72] : memref<8x128xf32, #tpu.memory_space<vmem>>, vector<8x8xf32>
    tpu.vector_store %arg8[%c0_115, %c72], %164 {strides = array<i32>} : memref<8x128xf32, #tpu.memory_space<vmem>>, vector<8x8xf32>,
    %166 = vector.extract_strided_slice %145 {offsets = [80, 0], sizes = [8, 8], strides = [1, 1]} : vector<128x8xf32> to vector<8x8xf32>
    %c0_116 = arith.constant 0 : index
    %c80 = arith.constant 80 : index
    %167 = vector.load %arg8[%c0_116, %c80] : memref<8x128xf32, #tpu.memory_space<vmem>>, vector<8x8xf32>
    tpu.vector_store %arg8[%c0_116, %c80], %166 {strides = array<i32>} : memref<8x128xf32, #tpu.memory_space<vmem>>, vector<8x8xf32>,
    %168 = vector.extract_strided_slice %145 {offsets = [88, 0], sizes = [8, 8], strides = [1, 1]} : vector<128x8xf32> to vector<8x8xf32>
    %c0_117 = arith.constant 0 : index
    %c88 = arith.constant 88 : index
    %169 = vector.load %arg8[%c0_117, %c88] : memref<8x128xf32, #tpu.memory_space<vmem>>, vector<8x8xf32>
    tpu.vector_store %arg8[%c0_117, %c88], %168 {strides = array<i32>} : memref<8x128xf32, #tpu.memory_space<vmem>>, vector<8x8xf32>,
    %170 = vector.extract_strided_slice %145 {offsets = [96, 0], sizes = [8, 8], strides = [1, 1]} : vector<128x8xf32> to vector<8x8xf32>
    %c0_118 = arith.constant 0 : index
    %c96 = arith.constant 96 : index
    %171 = vector.load %arg8[%c0_118, %c96] : memref<8x128xf32, #tpu.memory_space<vmem>>, vector<8x8xf32>
    tpu.vector_store %arg8[%c0_118, %c96], %170 {strides = array<i32>} : memref<8x128xf32, #tpu.memory_space<vmem>>, vector<8x8xf32>,
    %172 = vector.extract_strided_slice %145 {offsets = [104, 0], sizes = [8, 8], strides = [1, 1]} : vector<128x8xf32> to vector<8x8xf32>
    %c0_119 = arith.constant 0 : index
    %c104 = arith.constant 104 : index
    %173 = vector.load %arg8[%c0_119, %c104] : memref<8x128xf32, #tpu.memory_space<vmem>>, vector<8x8xf32>
    tpu.vector_store %arg8[%c0_119, %c104], %172 {strides = array<i32>} : memref<8x128xf32, #tpu.memory_space<vmem>>, vector<8x8xf32>,
    %174 = vector.extract_strided_slice %145 {offsets = [112, 0], sizes = [8, 8], strides = [1, 1]} : vector<128x8xf32> to vector<8x8xf32>
    %c0_120 = arith.constant 0 : index
    %c112 = arith.constant 112 : index
    %175 = vector.load %arg8[%c0_120, %c112] : memref<8x128xf32, #tpu.memory_space<vmem>>, vector<8x8xf32>
    tpu.vector_store %arg8[%c0_120, %c112], %174 {strides = array<i32>} : memref<8x128xf32, #tpu.memory_space<vmem>>, vector<8x8xf32>,
    %176 = vector.extract_strided_slice %145 {offsets = [120, 0], sizes = [8, 8], strides = [1, 1]} : vector<128x8xf32> to vector<8x8xf32>
    %c0_121 = arith.constant 0 : index
    %c120 = arith.constant 120 : index
    %177 = vector.load %arg8[%c0_121, %c120] : memref<8x128xf32, #tpu.memory_space<vmem>>, vector<8x8xf32>
    tpu.vector_store %arg8[%c0_121, %c120], %176 {strides = array<i32>} : memref<8x128xf32, #tpu.memory_space<vmem>>, vector<8x8xf32>,
    return
  }
  func.func @transform_0(%arg0: i32) -> (i32, i32, i32, i32, i32) {
    %c0_i32 = arith.constant 0 : i32
    %c0_i32_0 = arith.constant 0 : i32
    %c0_i32_1 = arith.constant 0 : i32
    %c0_i32_2 = arith.constant 0 : i32
    %c0_i32_3 = arith.constant 0 : i32
    %c0_i32_4 = arith.constant 0 : i32
    return %c0_i32, %c0_i32_0, %c0_i32_1, %c0_i32_2, %c0_i32_3 : i32, i32, i32, i32, i32
  }
  func.func @transform_1(%arg0: i32) -> (i32, i32) {
    %c0_i32 = arith.constant 0 : i32
    %c0_i32_0 = arith.constant 0 : i32
    %c0_i32_1 = arith.constant 0 : i32
    return %c0_i32, %c0_i32_0 : i32, i32
  }
  func.func @transform_2(%arg0: i32) -> (i32, i32) {
    %c0_i32 = arith.constant 0 : i32
    %c0_i32_0 = arith.constant 0 : i32
    %c0_i32_1 = arith.constant 0 : i32
    return %c0_i32, %c0_i32_0 : i32, i32
  }
  func.func @transform_3(%arg0: i32) -> (i32, i32) {
    %c0_i32 = arith.constant 0 : i32
    %c0_i32_0 = arith.constant 0 : i32
    %c0_i32_1 = arith.constant 0 : i32
    return %c0_i32, %c0_i32_0 : i32, i32
  }
  func.func @transform_4(%arg0: i32) -> (i32, i32) {
    %c0_i32 = arith.constant 0 : i32
    %c0_i32_0 = arith.constant 0 : i32
    %c0_i32_1 = arith.constant 0 : i32
    return %c0_i32, %c0_i32_0 : i32, i32
  }
  func.func @transform_5(%arg0: i32) -> (i32, i32) {
    %c0_i32 = arith.constant 0 : i32
    %c0_i32_0 = arith.constant 0 : i32
    %c0_i32_1 = arith.constant 0 : i32
    return %c0_i32, %c0_i32_0 : i32, i32
  }
  func.func @transform_6(%arg0: i32) -> (i32, i32) {
    %c0_i32 = arith.constant 0 : i32
    %c0_i32_0 = arith.constant 0 : i32
    %c0_i32_1 = arith.constant 0 : i32
    return %c0_i32, %c0_i32_0 : i32, i32
  }
  func.func @transform_7(%arg0: i32) -> (i32, i32) {
    %c0_i32 = arith.constant 0 : i32
    %c0_i32_0 = arith.constant 0 : i32
    %c0_i32_1 = arith.constant 0 : i32
    return %c0_i32, %c0_i32_0 : i32, i32
  }
}

</mosaic_0001>

<bundles_post_ra>
// kernel: down_apply.1
= control target key start
LH: loop header
LB: loop body
LE: loop exit
PB: predicated region body
PF: predicated region fallthrough
CT: control target
= control target key end

     0   :  { %vm155_vm0 = vcmask 31744   ;;  %vm157_vm1 = vcmask 25600   ;;  %v2035_v3 = vmov 0.0   ;;  %s2036_s17 = smov 124   ;;  %s2039_s22 = smov 4   ;;  %vm705_vm2 = vcmask 1041408   ;;  %s3260_s0 = inlined_call_operand.vmem [shape: f32[2,8,2,8,8], index: 0, kind: input, shape index: {}]   ;;  %s3261_s1 = inlined_call_operand.vmem [shape: bf16[36,8], index: 1, kind: input, shape index: {}]   ;;  %s3262_s3 = inlined_call_operand.vmem [shape: f32[1,8], index: 3, kind: input, shape index: {}]   ;;  %s3263_s4 = inlined_call_operand.vmem [shape: f32[1,8], index: 4, kind: input, shape index: {}]   ;;  %s3264_s2 = inlined_call_operand.vmem [shape: bf16[72,8], index: 2, kind: input, shape index: {}]   ;;  %s3265_s5 = inlined_call_operand.vmem [shape: f32[1,8], index: 5, kind: input, shape index: {}]   ;;  %s3266_s6 = inlined_call_operand.vmem [shape: f32[1,8], index: 6, kind: input, shape index: {}]   ;;  %s3267_s7 = inlined_call_operand.vmem [shape: f32[8,128], index: 7, kind: output, shape index: {}]  }
   0x1   :  { %v31_v0 = vld [vmem:[%s3260_s0 + $0x20] sm:$0xff]  ;;  %v32_v1 = vld [vmem:[%s3260_s0 + $0x28] sm:$0xff]  ;;  %163 = vst.msk [vmem:[#allocation2 + $0x30] sm:$0xff] %vm155_vm0, %v2035_v3  ;;  %156 = vst.msk [vmem:[#allocation2] sm:$0xff] %vm155_vm0, %v2035_v3  ;;  %s2040_s23 = smov 16   ;;  %s2041_s26 = smov 28  }
   0x2   :  { %v27_v2 = vld [vmem:[%s3260_s0] sm:$0xff]  ;;  %164 = vst.msk [vmem:[#allocation2 + $0x38] sm:$0x3] %vm157_vm1, %v2035_v3  ;;  %158 = vst.msk [vmem:[#allocation2 + $0x8] sm:$0x3] %vm157_vm1, %v2035_v3  ;;  %v2185_v4 = vmax.f32 %v31_v0, %v32_v1  ;;  %v28_v5 = vld [vmem:[%s3260_s0 + $0x8] sm:$0xff] }
   0x3   :  { %159 = vst.msk [vmem:[#allocation2 + $0x10] sm:$0xff] %vm155_vm0, %v2035_v3  ;;  %161 = vst.msk [vmem:[#allocation2 + $0x20] sm:$0xff] %vm155_vm0, %v2035_v3  ;;  %v33_v6 = vld [vmem:[%s3260_s0 + $0x30] sm:$0xff]  ;;  %v34_v7 = vld [vmem:[%s3260_s0 + $0x38] sm:$0xff]  ;;  %v2196_v8 = vmax.f32 %v27_v2, %v28_v5  ;;  %s2042_s29 = smov 8   ;;  %s2043_s9 = smov 20  }
   0x4   :  { %160 = vst.msk [vmem:[#allocation2 + $0x18] sm:$0x3] %vm157_vm1, %v2035_v3  ;;  %162 = vst.msk [vmem:[#allocation2 + $0x28] sm:$0x3] %vm157_vm1, %v2035_v3  ;;  %v29_v9 = vld [vmem:[%s3260_s0 + $0x10] sm:$0xff]  ;;  %v30_v10 = vld [vmem:[%s3260_s0 + $0x18] sm:$0xff]  ;;  %95 = vrot.lane.b32.xlu1 %v2185_v4, %s2036_s17  ;;  %v2206_v11 = vmax.f32 %v33_v6, %v34_v7 }
   0x5   :  { %165 = vst.msk [vmem:[#allocation2 + $0x40] sm:$0xff] %vm155_vm0, %v2035_v3  ;;  %167 = vst.msk [vmem:[#allocation2 + $0x50] sm:$0xff] %vm155_vm0, %v2035_v3  ;;  %91 = vrot.lane.b32.xlu0 %v2196_v8, %s2036_s17  ;;  %v2210_v12 = vmax.f32 %v29_v9, %v30_v10  ;;  %v37_v13 = vld [vmem:[%s3260_s0 + $0x50] sm:$0xff]  ;;  %v38_v14 = vld [vmem:[%s3260_s0 + $0x58] sm:$0xff]  ;;  %s2044_s10 = smov 32   ;;  %vm290_vm3 = vcmask 130144  }
   0x6   :  { %166 = vst.msk [vmem:[#allocation2 + $0x48] sm:$0x3] %vm157_vm1, %v2035_v3  ;;  %168 = vst.msk [vmem:[#allocation2 + $0x58] sm:$0x3] %vm157_vm1, %v2035_v3  ;;  %v35_v15 = vld [vmem:[%s3260_s0 + $0x40] sm:$0xff]  ;;  %v36_v16 = vld [vmem:[%s3260_s0 + $0x48] sm:$0xff]  ;;  %v2226_v17 = vmax.f32 %v37_v13, %v38_v14 }
   0x7   :  { %169 = vst.msk [vmem:[#allocation2 + $0x60] sm:$0xff] %vm155_vm0, %v2035_v3  ;;  %171 = vst.msk [vmem:[#allocation2 + $0x70] sm:$0xff] %vm155_vm0, %v2035_v3  ;;  %v2230_v18 = vmax.f32 %v35_v15, %v36_v16  ;;  %v41_v19 = vld [vmem:[%s3260_s0 + $0x70] sm:$0xff]  ;;  %v42_v20 = vld [vmem:[%s3260_s0 + $0x78] sm:$0xff]  ;;  %vm333_vm4 = vcmask 228544   ;;  %vm402_vm5 = vcmask 64544  }
   0x8   :  { %170 = vst.msk [vmem:[#allocation2 + $0x68] sm:$0x3] %vm157_vm1, %v2035_v3  ;;  %172 = vst.msk [vmem:[#allocation2 + $0x78] sm:$0x3] %vm157_vm1, %v2035_v3  ;;  %97 = vrot.lane.b32.xlu1 %v2206_v11, %s2036_s17  ;;  %v39_v21 = vld [vmem:[%s3260_s0 + $0x60] sm:$0xff]  ;;  %v40_v22 = vld [vmem:[%s3260_s0 + $0x68] sm:$0xff]  ;;  %v2246_v23 = vmax.f32 %v41_v19, %v42_v20 }
   0x9   :  { %173 = vst.msk [vmem:[#allocation2 + $0x80] sm:$0xff] %vm155_vm0, %v2035_v3  ;;  %175 = vst.msk [vmem:[#allocation2 + $0x90] sm:$0xff] %vm155_vm0, %v2035_v3  ;;  %93 = vrot.lane.b32.xlu0 %v2210_v12, %s2036_s17  ;;  %v2250_v24 = vmax.f32 %v39_v21, %v40_v22  ;;  %v45_v25 = vld [vmem:[%s3260_s0 + $0x90] sm:$0xff]  ;;  %v46_v26 = vld [vmem:[%s3260_s0 + $0x98] sm:$0xff]  ;;  %vm451_vm6 = vcmask 162944   ;;  %vm488_vm7 = vcmask 261344  }
   0xa   :  { %174 = vst.msk [vmem:[#allocation2 + $0x88] sm:$0x3] %vm157_vm1, %v2035_v3  ;;  %176 = vst.msk [vmem:[#allocation2 + $0x98] sm:$0x3] %vm157_vm1, %v2035_v3  ;;  %v43_v27 = vld [vmem:[%s3260_s0 + $0x80] sm:$0xff]  ;;  %v44_v28 = vld [vmem:[%s3260_s0 + $0x88] sm:$0xff]  ;;  %v2266_v29 = vmax.f32 %v45_v25, %v46_v26 }
   0xb   :  { %177 = vst.msk [vmem:[#allocation2 + $0xa0] sm:$0xff] %vm155_vm0, %v2035_v3  ;;  %179 = vst.msk [vmem:[#allocation2 + $0xb0] sm:$0xff] %vm155_vm0, %v2035_v3  ;;  %v2270_v30 = vmax.f32 %v43_v27, %v44_v28  ;;  %v49_v31 = vld [vmem:[%s3260_s0 + $0xb0] sm:$0xff]  ;;  %v50_v32 = vld [vmem:[%s3260_s0 + $0xb8] sm:$0xff]  ;;  %vm557_vm8 = vcmask 97344   ;;  %vm606_vm9 = vcmask 195744  }
   0xc   :  { %178 = vst.msk [vmem:[#allocation2 + $0xa8] sm:$0x3] %vm157_vm1, %v2035_v3  ;;  %180 = vst.msk [vmem:[#allocation2 + $0xb8] sm:$0x3] %vm157_vm1, %v2035_v3  ;;  %101 = vrot.lane.b32.xlu1 %v2226_v17, %s2036_s17  ;;  %v47_v33 = vld [vmem:[%s3260_s0 + $0xa0] sm:$0xff]  ;;  %v48_v34 = vld [vmem:[%s3260_s0 + $0xa8] sm:$0xff]  ;;  %v2286_v35 = vmax.f32 %v49_v31, %v50_v32 }
   0xd   :  { %181 = vst.msk [vmem:[#allocation2 + $0xc0] sm:$0xff] %vm155_vm0, %v2035_v3  ;;  %183 = vst.msk [vmem:[#allocation2 + $0xd0] sm:$0xff] %vm155_vm0, %v2035_v3  ;;  %99 = vrot.lane.b32.xlu0 %v2230_v18, %s2036_s17  ;;  %v2290_v36 = vmax.f32 %v47_v33, %v48_v34  ;;  %v53_v37 = vld [vmem:[%s3260_s0 + $0xd0] sm:$0xff]  ;;  %v54_v38 = vld [vmem:[%s3260_s0 + $0xd8] sm:$0xff]  ;;  %vm643_vm10 = vcmask 294144   ;;  %vm680_vm11 = vcmask 293888  }
   0xe   :  { %182 = vst.msk [vmem:[#allocation2 + $0xc8] sm:$0x3] %vm157_vm1, %v2035_v3  ;;  %184 = vst.msk [vmem:[#allocation2 + $0xd8] sm:$0x3] %vm157_vm1, %v2035_v3  ;;  %v51_v39 = vld [vmem:[%s3260_s0 + $0xc0] sm:$0xff]  ;;  %v52_v40 = vld [vmem:[%s3260_s0 + $0xc8] sm:$0xff]  ;;  %v2306_v41 = vmax.f32 %v53_v37, %v54_v38 }
   0xf   :  { %185 = vst.msk [vmem:[#allocation2 + $0xe0] sm:$0xff] %vm155_vm0, %v2035_v3  ;;  %187 = vst.msk [vmem:[#allocation2 + $0xf0] sm:$0xff] %vm155_vm0, %v2035_v3  ;;  %v2310_v42 = vmax.f32 %v51_v39, %v52_v40  ;;  %v57_v43 = vld [vmem:[%s3260_s0 + $0xf0] sm:$0xff]  ;;  %v58_v44 = vld [vmem:[%s3260_s0 + $0xf8] sm:$0xff]  ;;  %vm808_vm12 = vcmask 64512   ;;  %vm979_vm13 = vcmask 58368  }
  0x10   :  { %186 = vst.msk [vmem:[#allocation2 + $0xe8] sm:$0x3] %vm157_vm1, %v2035_v3  ;;  %188 = vst.msk [vmem:[#allocation2 + $0xf8] sm:$0x3] %vm157_vm1, %v2035_v3  ;;  %105 = vrot.lane.b32.xlu1 %v2246_v23, %s2036_s17  ;;  %v55_v45 = vld [vmem:[%s3260_s0 + $0xe0] sm:$0xff]  ;;  %v56_v46 = vld [vmem:[%s3260_s0 + $0xe8] sm:$0xff]  ;;  %v2326_v47 = vmax.f32 %v57_v43, %v58_v44 }
  0x11   :  { %189 = vst.msk [vmem:[#allocation2 + $0x100] sm:$0xff] %vm155_vm0, %v2035_v3  ;;  %191 = vst.msk [vmem:[#allocation2 + $0x110] sm:$0xff] %vm155_vm0, %v2035_v3  ;;  %103 = vrot.lane.b32.xlu0 %v2250_v24, %s2036_s17  ;;  %v2330_v48 = vmax.f32 %v55_v45, %v56_v46  ;;  %v214_v60 = vld [vmem:[#allocation2] sm:$0xff]  ;;  %s2037_s0 = smov 12   ;;  %s2046_s18 = smov 56   ;;  %vm1543_vm14 = vcmask 1043456  }
  0x12   :  { %190 = vst.msk [vmem:[#allocation2 + $0x108] sm:$0x3] %vm157_vm1, %v2035_v3  ;;  %192 = vst.msk [vmem:[#allocation2 + $0x118] sm:$0x3] %vm157_vm1, %v2035_v3  ;;  %v497_v46 = vld [vmem:[#allocation2 + $0x2] sm:$0xff]  ;;  %vm1112_vm15 = vcmask 261312  }
  0x13   :  { %193 = vst.msk [vmem:[#allocation2 + $0x120] sm:$0xff] %vm155_vm0, %v2035_v3  ;;  %195 = vst.msk [vmem:[#allocation2 + $0x130] sm:$0xff] %vm155_vm0, %v2035_v3  ;;  %s2052_s8 = smov 88  }
  0x14   :  { %194 = vst.msk [vmem:[#allocation2 + $0x128] sm:$0x3] %vm157_vm1, %v2035_v3  ;;  %196 = vst.msk [vmem:[#allocation2 + $0x138] sm:$0x3] %vm157_vm1, %v2035_v3  ;;  %109 = vrot.lane.b32.xlu1 %v2266_v29, %s2036_s17  ;;  %vm1224_vm1 = vcmask 130112  }
  0x15   :  { %107 = vrot.lane.b32.xlu0 %v2270_v30, %s2036_s17  ;;  %978 = vst.msk [vmem:[#allocation4] sm:$0xff] %vm808_vm12, %v2035_v3  ;;  %981 = vst.msk [vmem:[#allocation4 + $0x10] sm:$0xff] %vm808_vm12, %v2035_v3 }
  0x16   :  { %983 = vst.msk [vmem:[#allocation4 + $0x20] sm:$0xff] %vm808_vm12, %v2035_v3  ;;  %985 = vst.msk [vmem:[#allocation4 + $0x30] sm:$0xff] %vm808_vm12, %v2035_v3 }
  0x17   :  { %987 = vst.msk [vmem:[#allocation4 + $0x40] sm:$0xff] %vm808_vm12, %v2035_v3  ;;  %989 = vst.msk [vmem:[#allocation4 + $0x50] sm:$0xff] %vm808_vm12, %v2035_v3 }
  0x18   :  { %113 = vrot.lane.b32.xlu1 %v2286_v35, %s2036_s17  ;;  %991 = vst.msk [vmem:[#allocation4 + $0x60] sm:$0xff] %vm808_vm12, %v2035_v3  ;;  %993 = vst.msk [vmem:[#allocation4 + $0x70] sm:$0xff] %vm808_vm12, %v2035_v3 }
  0x19   :  { %111 = vrot.lane.b32.xlu0 %v2290_v36, %s2036_s17  ;;  %995 = vst.msk [vmem:[#allocation4 + $0x80] sm:$0xff] %vm808_vm12, %v2035_v3  ;;  %997 = vst.msk [vmem:[#allocation4 + $0x90] sm:$0xff] %vm808_vm12, %v2035_v3 }
  0x1a   :  { %999 = vst.msk [vmem:[#allocation4 + $0xa0] sm:$0xff] %vm808_vm12, %v2035_v3  ;;  %1001 = vst.msk [vmem:[#allocation4 + $0xb0] sm:$0xff] %vm808_vm12, %v2035_v3 }
  0x1b   :  { %1003 = vst.msk [vmem:[#allocation4 + $0xc0] sm:$0xff] %vm808_vm12, %v2035_v3  ;;  %1005 = vst.msk [vmem:[#allocation4 + $0xd0] sm:$0xff] %vm808_vm12, %v2035_v3 }
  0x1c   :  { %117 = vrot.lane.b32.xlu1 %v2306_v41, %s2036_s17  ;;  %1007 = vst.msk [vmem:[#allocation4 + $0xe0] sm:$0xff] %vm808_vm12, %v2035_v3  ;;  %1009 = vst.msk [vmem:[#allocation4 + $0xf0] sm:$0xff] %vm808_vm12, %v2035_v3 }
  0x1d   :  { %115 = vrot.lane.b32.xlu0 %v2310_v42, %s2036_s17  ;;  %1011 = vst.msk [vmem:[#allocation4 + $0x100] sm:$0xff] %vm808_vm12, %v2035_v3  ;;  %1013 = vst.msk [vmem:[#allocation4 + $0x110] sm:$0xff] %vm808_vm12, %v2035_v3 }
  0x1e   :  { %1015 = vst.msk [vmem:[#allocation4 + $0x120] sm:$0xff] %vm808_vm12, %v2035_v3  ;;  %1017 = vst.msk [vmem:[#allocation4 + $0x130] sm:$0xff] %vm808_vm12, %v2035_v3 }
  0x1f   :  { %996 = vst.msk [vmem:[#allocation4 + $0x88] sm:$0x3] %vm979_vm13, %v2035_v3  ;;  %1002 = vst.msk [vmem:[#allocation4 + $0xb8] sm:$0x3] %vm979_vm13, %v2035_v3 }
  0x20   :  { %121 = vrot.lane.b32.xlu1 %v2326_v47, %s2036_s17  ;;  %1004 = vst.msk [vmem:[#allocation4 + $0xc8] sm:$0x3] %vm979_vm13, %v2035_v3  ;;  %1006 = vst.msk [vmem:[#allocation4 + $0xd8] sm:$0x3] %vm979_vm13, %v2035_v3 }
  0x21   :  { %119 = vrot.lane.b32.xlu0 %v2330_v48, %s2036_s17  ;;  %s2038_s17 = smov 24   ;;  %1008 = vst.msk [vmem:[#allocation4 + $0xe8] sm:$0x3] %vm979_vm13, %v2035_v3  ;;  %1010 = vst.msk [vmem:[#allocation4 + $0xf8] sm:$0x3] %vm979_vm13, %v2035_v3 }
  0x22   :  { %1012 = vst.msk [vmem:[#allocation4 + $0x108] sm:$0x3] %vm979_vm13, %v2035_v3  ;;  %1014 = vst.msk [vmem:[#allocation4 + $0x118] sm:$0x3] %vm979_vm13, %v2035_v3 }
  0x23   :  { %1016 = vst.msk [vmem:[#allocation4 + $0x128] sm:$0x3] %vm979_vm13, %v2035_v3  ;;  %980 = vst.msk [vmem:[#allocation4 + $0x8] sm:$0x3] %vm979_vm13, %v2035_v3 }
  0x24   :  { %982 = vst.msk [vmem:[#allocation4 + $0x18] sm:$0x3] %vm979_vm13, %v2035_v3  ;;  %984 = vst.msk [vmem:[#allocation4 + $0x28] sm:$0x3] %vm979_vm13, %v2035_v3 }
  0x25   :  { %986 = vst.msk [vmem:[#allocation4 + $0x38] sm:$0x3] %vm979_vm13, %v2035_v3  ;;  %988 = vst.msk [vmem:[#allocation4 + $0x48] sm:$0x3] %vm979_vm13, %v2035_v3 }
  0x26   :  { %990 = vst.msk [vmem:[#allocation4 + $0x58] sm:$0x3] %vm979_vm13, %v2035_v3  ;;  %992 = vst.msk [vmem:[#allocation4 + $0x68] sm:$0x3] %vm979_vm13, %v2035_v3 }
  0x27   :  { %994 = vst.msk [vmem:[#allocation4 + $0x78] sm:$0x3] %vm979_vm13, %v2035_v3  ;;  %998 = vst.msk [vmem:[#allocation4 + $0x98] sm:$0x3] %vm979_vm13, %v2035_v3 }
  0x28   :  { %1000 = vst.msk [vmem:[#allocation4 + $0xa8] sm:$0x3] %vm979_vm13, %v2035_v3  ;;  %1018 = vst.msk [vmem:[#allocation4 + $0x138] sm:$0x3] %vm979_vm13, %v2035_v3  ;;  %vm1890_vm13 = vcmask 982912  }
  0x76   :  { %v96_v49 = vpop.permute.xlu1 %95 }
  0x77   :  { %v141_v50 = vmax.f32 %v2185_v4, %v96_v49  ;;  %v92_v51 = vpop.permute.xlu0 %91 }
  0x78   :  { %v139_v52 = vmax.f32 %v2196_v8, %v92_v51 }
  0x79   :  { %200 = vst.msk [vmem:[#allocation2 + $0x31] sm:$0xff] %vm155_vm0, %v141_v50 }
  0x7a   :  { %198 = vst.msk [vmem:[#allocation2 + $0x11] sm:$0xff] %vm155_vm0, %v139_v52  ;;  %v98_v53 = vpop.permute.xlu1 %97 }
  0x7b   :  { %v142_v54 = vmax.f32 %v2206_v11, %v98_v53  ;;  %v94_v55 = vpop.permute.xlu0 %93 }
  0x7c   :  { %v140_v56 = vmax.f32 %v2210_v12, %v94_v55 }
  0x7d   :  { %201 = vst.msk [vmem:[#allocation2 + $0x41] sm:$0xff] %vm155_vm0, %v142_v54 }
  0x7e   :  { %199 = vst.msk [vmem:[#allocation2 + $0x21] sm:$0xff] %vm155_vm0, %v140_v56  ;;  %v102_v57 = vpop.permute.xlu1 %101 }
  0x7f   :  { %v100_v58 = vpop.permute.xlu0 %99  ;;  %v144_v59 = vmax.f32 %v2226_v17, %v102_v57 }
  0x80   :  { %v143_v61 = vmax.f32 %v2230_v18, %v100_v58  ;;  %v217_v4 = vld [vmem:[#allocation2 + $0x30] sm:$0xff]  ;;  %v342_v18 = vld [vmem:[#allocation2 + $0x1] sm:$0xff] }
  0x81   :  { %203 = vst.msk [vmem:[#allocation2 + $0x61] sm:$0xff] %vm155_vm0, %v144_v59  ;;  %v215_v62 = vld [vmem:[#allocation2 + $0x10] sm:$0xff] }
  0x82   :  { %202 = vst.msk [vmem:[#allocation2 + $0x51] sm:$0xff] %vm155_vm0, %v143_v61  ;;  %v106_v63 = vpop.permute.xlu1 %105  ;;  %v234_v0 = vpack.c.bf16 %v215_v62, %v214_v60  ;;  %v343_v19 = vld [vmem:[#allocation2 + $0x11] sm:$0xff]  ;;  %v2024_v61 = vld [vmem:[%s3261_s1 + $0x8] sm:$0xff]  }
  0x83   :  { %v104_v1 = vpop.permute.xlu0 %103  ;;  %v146_v2 = vmax.f32 %v2246_v23, %v106_v63  ;;  %v362_v27 = vpack.c.bf16 %v343_v19, %v342_v18  ;;  %v498_v49 = vld [vmem:[#allocation2 + $0x12] sm:$0xff] }
  0x84   :  { %v218_v5 = vld [vmem:[#allocation2 + $0x40] sm:$0xff]  ;;  %v145_v6 = vmax.f32 %v2250_v24, %v104_v1  ;;  %242 = vst.msk [vmem:[#allocation3] sm:$0xff] %vm155_vm0, %v234_v0  ;;  %v345_v24 = vld [vmem:[#allocation2 + $0x31] sm:$0xff]  ;;  %v517_v57 = vpack.c.bf16 %v498_v49, %v497_v46 }
  0x85   :  { %v251_v7 = vpack.c.bf16 %v218_v5, %v217_v4  ;;  %v216_v8 = vld [vmem:[#allocation2 + $0x20] sm:$0xff]  ;;  %205 = vst.msk [vmem:[#allocation2 + $0x81] sm:$0xff] %vm155_vm0, %v146_v2  ;;  %v500_v55 = vld [vmem:[#allocation2 + $0x32] sm:$0xff] }
  0x86   :  { %v250_v9 = vpack.c.bf16 %v216_v8, %v215_v62  ;;  %v235_v10 = vpack.c.bf16 %v217_v4, %v216_v8  ;;  %204 = vst.msk [vmem:[#allocation2 + $0x71] sm:$0xff] %vm155_vm0, %v145_v6  ;;  %v110_v11 = vpop.permute.xlu1 %109  ;;  %v344_v20 = vld [vmem:[#allocation2 + $0x21] sm:$0xff]  ;;  %v2025_v4 = vld [vmem:[%s3261_s1 + $0x10] ss:$0 sps:$4 sm:$0x33]  }
  0x87   :  { %268 = vrot.lane.b32.xlu1 %v251_v7, %s2037_s0  ;;  %v108_v12 = vpop.permute.xlu0 %107  ;;  %v148_v13 = vmax.f32 %v2266_v29, %v110_v11  ;;  %v363_v28 = vpack.c.bf16 %v345_v24, %v344_v20  ;;  %v346_v31 = vld [vmem:[#allocation2 + $0x41] sm:$0xff]  ;;  %v411_v37 = vpack.c.bf16 %v344_v20, %v343_v19  ;;  %v223_v11 = vld [vmem:[#allocation2 + $0x90] sm:$0xff] }
  0x88   :  { %266 = vrot.lane.b32.xlu0 %v250_v9, %s2037_s0  ;;  %243 = vst.msk [vmem:[#allocation3 + $0x8] sm:$0xff] %vm155_vm0, %v235_v10  ;;  %v147_v14 = vmax.f32 %v2270_v30, %v108_v12  ;;  %v2368_v25 = vld [vmem:[#allocation2 + $0x60] sm:$0xff]  ;;  %v412_v38 = vpack.c.bf16 %v346_v31, %v345_v24  ;;  %v351_v19 = vld [vmem:[#allocation2 + $0x91] sm:$0xff] }
  0x89   :  { %v2358_v15 = vld [vmem:[#allocation2 + $0x50] sm:$0xff]  ;;  %207 = vst.msk [vmem:[#allocation2 + $0xc1] sm:$0xff] %vm155_vm0, %v148_v13  ;;  %v499_v50 = vld [vmem:[#allocation2 + $0x22] sm:$0xff] }
  0x8a   :  { %v236_v16 = vpack.c.bf16 %v2358_v15, %v218_v5  ;;  %206 = vst.msk [vmem:[#allocation2 + $0xb1] sm:$0xff] %vm155_vm0, %v147_v14  ;;  %v114_v17 = vpop.permute.xlu1 %113  ;;  %v2388_v40 = vld [vmem:[#allocation2 + $0x51] sm:$0xff]  ;;  %v518_v58 = vpack.c.bf16 %v500_v55, %v499_v50  ;;  %v501_v62 = vld [vmem:[#allocation2 + $0x42] sm:$0xff]  ;;  %v566_v0 = vpack.c.bf16 %v499_v50, %v498_v49  ;;  %v707_v5 = vsel %vm705_vm2, %v2025_v4, 0 }
  0x8b   :  { %v112_v21 = vpop.permute.xlu0 %111  ;;  %v150_v22 = vmax.f32 %v2286_v35, %v114_v17  ;;  %v224_v35 = vld [vmem:[#allocation2 + $0xa0] sm:$0xff]  ;;  %v567_v1 = vpack.c.bf16 %v501_v62, %v500_v55  ;;  %v252_v7 = vpack.c.bf16 %v2368_v25, %v2358_v15  ;;  %v502_v8 = vld [vmem:[#allocation2 + $0x52] sm:$0xff] }
  0x8c   :  { %309 = vrot.lane.b32.xlu0 %v235_v10, %s2038_s17  ;;  %311 = vrot.lane.b32.xlu1 %v236_v16, %s2038_s17  ;;  %244 = vst.msk [vmem:[#allocation3 + $0x10] sm:$0xff] %vm155_vm0, %v236_v16  ;;  %v149_v23 = vmax.f32 %v2290_v36, %v112_v21  ;;  %v222_v6 = vld [vmem:[#allocation2 + $0x80] sm:$0xff]  ;;  %v519_v10 = vpack.c.bf16 %v502_v8, %v501_v62 }
  0x8d   :  { %v2370_v26 = vld [vmem:[#allocation2 + $0x70] sm:$0xff]  ;;  %209 = vst.msk [vmem:[#allocation2 + $0xe1] sm:$0xff] %vm155_vm0, %v150_v22  ;;  %v299_v12 = vpack.c.bf16 %v223_v11, %v222_v6  ;;  %v348_v14 = vld [vmem:[#allocation2 + $0x61] sm:$0xff] }
  0x8e   :  { %v2375_v29 = vpack.c.bf16 %v2370_v26, %v2368_v25  ;;  %208 = vst.msk [vmem:[#allocation2 + $0xd1] sm:$0xff] %vm155_vm0, %v149_v23  ;;  %v118_v30 = vpop.permute.xlu1 %117  ;;  %v253_v9 = vpack.c.bf16 %v222_v6, %v2370_v26  ;;  %v349_v13 = vld [vmem:[#allocation2 + $0x71] sm:$0xff]  ;;  %v350_v16 = vld [vmem:[#allocation2 + $0x81] sm:$0xff]  ;;  %v413_v18 = vpack.c.bf16 %v348_v14, %v2388_v40 }
  0x8f   :  { %v116_v32 = vpop.permute.xlu0 %115  ;;  %v152_v33 = vmax.f32 %v2306_v41, %v118_v30  ;;  %v365_v15 = vpack.c.bf16 %v349_v13, %v348_v14  ;;  %v414_v17 = vpack.c.bf16 %v350_v16, %v349_v13  ;;  %v460_v20 = vpack.c.bf16 %v351_v19, %v350_v16  ;;  %v504_v21 = vld [vmem:[#allocation2 + $0x72] sm:$0xff]  ;;  %v503_v22 = vld [vmem:[#allocation2 + $0x62] sm:$0xff] }
  0x90   :  { %378 = vrot.lane.b32.xlu0 %v362_v27, %s2039_s22  ;;  %380 = vrot.lane.b32.xlu1 %v363_v28, %s2039_s22  ;;  %245 = vst.msk [vmem:[#allocation3 + $0x18] sm:$0xff] %vm155_vm0, %v2375_v29  ;;  %v151_v34 = vmax.f32 %v2310_v42, %v116_v32  ;;  %v2390_v41 = vld [vmem:[#allocation2 + $0xc0] sm:$0xff]  ;;  %v520_v23 = vpack.c.bf16 %v504_v21, %v503_v22 }
  0x91   :  { %211 = vst.msk [vmem:[#allocation2 + $0x101] sm:$0xff] %vm155_vm0, %v152_v33  ;;  %v2385_v36 = vld [vmem:[#allocation2 + $0xb0] sm:$0xff]  ;;  %v505_v24 = vld [vmem:[#allocation2 + $0x82] sm:$0xff]  ;;  %v568_v26 = vpack.c.bf16 %v503_v22, %v502_v8 }
  0x92   :  { %210 = vst.msk [vmem:[#allocation2 + $0xf1] sm:$0xff] %vm155_vm0, %v151_v34  ;;  %v122_v39 = vpop.permute.xlu1 %121  ;;  %v238_v45 = vpack.c.bf16 %v2385_v36, %v224_v35  ;;  %v569_v25 = vpack.c.bf16 %v505_v24, %v504_v21  ;;  %v254_v27 = vpack.c.bf16 %v2390_v41, %v2385_v36  ;;  %v353_v32 = vld [vmem:[#allocation2 + $0xb1] sm:$0xff]  ;;  %v354_v33 = vld [vmem:[#allocation2 + $0xc1] sm:$0xff] }
  0x93   :  { %v120_v43 = vpop.permute.xlu0 %119  ;;  %v154_v44 = vmax.f32 %v2326_v47, %v122_v39  ;;  %v364_v47 = vpack.c.bf16 %v2388_v40, %v346_v31  ;;  %v352_v31 = vld [vmem:[#allocation2 + $0xa1] sm:$0xff] }
  0x94   :  { %427 = vrot.lane.b32.xlu0 %v411_v37, %s2040_s23  ;;  %429 = vrot.lane.b32.xlu1 %v412_v38, %s2040_s23  ;;  %v153_v42 = vmax.f32 %v2330_v48, %v120_v43  ;;  %246 = vst.msk [vmem:[#allocation3 + $0x20] sm:$0xff] %vm155_vm0, %v238_v45  ;;  %v2023_v48 = vld [vmem:[%s3261_s1] sm:$0xff]   ;;  %v366_v35 = vpack.c.bf16 %v353_v32, %v352_v31  ;;  %s2055_s1 = smov 120  }
  0x95   :  { %v2397_v51 = vld [vmem:[#allocation2 + $0xd0] sm:$0xff]  ;;  %213 = vst.msk [vmem:[#allocation2 + $0x121] sm:$0xff] %vm155_vm0, %v154_v44  ;;  %v2410_v53 = vld [vmem:[#allocation2 + $0xe0] sm:$0xff]  ;;  %1952 = vmatprep.subr.bf16.mxu0 %v2023_v48  ;;  %v415_v38 = vpack.c.bf16 %v354_v33, %v353_v32 }
  0x96   :  { %v2404_v52 = vpack.c.bf16 %v2397_v51, %v2390_v41  ;;  %212 = vst.msk [vmem:[#allocation2 + $0x111] sm:$0xff] %vm155_vm0, %v153_v42  ;;  %1953 = vmatpush3.bf16.msra.mxu0 %v2023_v48  ;;  %v355_v34 = vld [vmem:[#allocation2 + $0xd1] sm:$0xff]  ;;  %v356_v37 = vld [vmem:[#allocation2 + $0xe1] sm:$0xff] }
  0x97   :  { %1954 = vmatprep.subr.bf16.mxu0 %v2024_v61  ;;  %v367_v36 = vpack.c.bf16 %v355_v34, %v354_v33  ;;  %v416_v39 = vpack.c.bf16 %v356_v37, %v355_v34  ;;  %v507_v43 = vld [vmem:[#allocation2 + $0xa2] sm:$0xff]  ;;  %v508_v44 = vld [vmem:[#allocation2 + $0xb2] sm:$0xff] }
  0x98   :  { %464 = vrot.lane.b32.xlu0 %v363_v28, %s2041_s26  ;;  %466 = vrot.lane.b32.xlu1 %v364_v47, %s2041_s26  ;;  %247 = vst.msk [vmem:[#allocation3 + $0x28] sm:$0xff] %vm155_vm0, %v2404_v52  ;;  %v2416_v54 = vld [vmem:[#allocation2 + $0x100] sm:$0xff]  ;;  %v506_v28 = vld [vmem:[#allocation2 + $0x92] sm:$0xff]  ;;  %v521_v46 = vpack.c.bf16 %v508_v44, %v507_v43 }
  0x99   :  { %v2418_v56 = vld [vmem:[#allocation2 + $0xf0] sm:$0xff]  ;;  %v615_v30 = vpack.c.bf16 %v506_v28, %v505_v24  ;;  %v509_v45 = vld [vmem:[#allocation2 + $0xc2] sm:$0xff] }
  0x9a   :  { %v2422_v59 = vpack.c.bf16 %v2418_v56, %v2410_v53  ;;  %v256_v60 = vpack.c.bf16 %v2416_v54, %v2418_v56  ;;  %1955 = vmatpush3.bf16.msra.mxu0 %v2024_v61  ;;  %v357_v40 = vld [vmem:[#allocation2 + $0xf1] sm:$0xff]  ;;  %v511_v50 = vld [vmem:[#allocation2 + $0xe2] sm:$0xff] }
  0x9b   :  { %2000 = vmatprep.subr.msk.bf16.mxu0 %vm705_vm2, %v2025_v4  ;;  %v368_v41 = vpack.c.bf16 %v357_v40, %v356_v37  ;;  %v510_v42 = vld [vmem:[#allocation2 + $0xd2] sm:$0xff]  ;;  %v358_v61 = vld [vmem:[#allocation2 + $0x101] sm:$0xff]  ;;  %vm1273_vm2 = vcmask 326912  }
  0x9c   :  { %533 = vrot.lane.b32.xlu0 %v517_v57, %s2042_s29  ;;  %535 = vrot.lane.b32.xlu1 %v518_v58, %s2042_s29  ;;  %248 = vst.msk [vmem:[#allocation3 + $0x30] sm:$0xff] %vm155_vm0, %v2422_v59  ;;  %v522_v49 = vpack.c.bf16 %v510_v42, %v509_v45  ;;  %v512_v48 = vld [vmem:[#allocation2 + $0xf2] sm:$0xff]  ;;  %v417_v56 = vpack.c.bf16 %v358_v61, %v357_v40  ;;  %v513_v4 = vld [vmem:[#allocation2 + $0x102] sm:$0xff] }
  0x9d   :  { %v2433_v63 = vld [vmem:[#allocation2 + $0x110] sm:$0xff]  ;;  %v523_v55 = vpack.c.bf16 %v512_v48, %v511_v50  ;;  %v572_v11 = vpack.c.bf16 %v513_v4, %v512_v48 }
  0x9e   :  { %v2437_v2 = vpack.c.bf16 %v2433_v63, %v2416_v54  ;;  %1957 = vmatpush3.bf16.msra.mxu0 %v707_v5  ;;  %v233_v57 = vld [vmem:[#allocation2 + $0x130] sm:$0xff] }
  0xa0   :  { %582 = vrot.lane.b32.xlu0 %v566_v0, %s2043_s9  ;;  %584 = vrot.lane.b32.xlu1 %v567_v1, %s2043_s9  ;;  %249 = vst.msk [vmem:[#allocation3 + $0x38] sm:$0xff] %vm155_vm0, %v2437_v2  ;;  %v360_v0 = vld [vmem:[#allocation2 + $0x121] sm:$0xff]  ;;  %v514_v1 = vld [vmem:[#allocation2 + $0x112] sm:$0xff]  ;;  %vm1155_vm0 = vcmask 458112  }
  0xa1   :  { %v524_v6 = vpack.c.bf16 %v514_v1, %v513_v4 }
  0xa4   :  { %619 = vrot.lane.b32.xlu0 %v518_v58, %s2044_s10  ;;  %270 = vrot.lane.b32.xlu1 %v252_v7, %s2037_s0  ;;  %v515_v7 = vld [vmem:[#allocation2 + $0x122] sm:$0xff] }
  0xa8   :  { %621 = vrot.lane.b32.xlu0 %v519_v10, %s2044_s10  ;;  %272 = vrot.lane.b32.xlu1 %v253_v9, %s2037_s0 }
  0xac   :  { %315 = vrot.lane.b32.xlu1 %v299_v12, %s2038_s17  ;;  %313 = vrot.lane.b32.xlu0 %v2375_v29, %s2038_s17  ;;  %v255_v29 = vpack.c.bf16 %v2410_v53, %v2397_v51  ;;  %v570_v51 = vpack.c.bf16 %v509_v45, %v508_v44  ;;  %v516_v12 = vld [vmem:[#allocation2 + $0x132] sm:$0xff] }
  0xb0   :  { %384 = vrot.lane.b32.xlu1 %v365_v15, %s2039_s22  ;;  %382 = vrot.lane.b32.xlu0 %v364_v47, %s2039_s22  ;;  %v571_v47 = vpack.c.bf16 %v511_v50, %v510_v42 }
  0xb4   :  { %433 = vrot.lane.b32.xlu1 %v414_v17, %s2040_s23  ;;  %431 = vrot.lane.b32.xlu0 %v413_v18, %s2040_s23 }
  0xb8   :  { %470 = vrot.lane.b32.xlu1 %v460_v20, %s2041_s26  ;;  %468 = vrot.lane.b32.xlu0 %v365_v15, %s2041_s26  ;;  %v616_v15 = vpack.c.bf16 %v516_v12, %v515_v7 }
  0xbc   :  { %539 = vrot.lane.b32.xlu1 %v520_v23, %s2042_s29  ;;  %537 = vrot.lane.b32.xlu0 %v519_v10, %s2042_s29  ;;  %v573_v10 = vpack.c.bf16 %v515_v7, %v514_v1 }
  0xc0   :  { %588 = vrot.lane.b32.xlu1 %v569_v25, %s2043_s9  ;;  %586 = vrot.lane.b32.xlu0 %v568_v26, %s2043_s9 }
  0xc4   :  { %623 = vrot.lane.b32.xlu0 %v520_v23, %s2044_s10  ;;  %274 = vrot.lane.b32.xlu1 %v254_v27, %s2037_s0 }
  0xc8   :  { %625 = vrot.lane.b32.xlu0 %v615_v30, %s2044_s10  ;;  %276 = vrot.lane.b32.xlu1 %v255_v29, %s2037_s0 }
  0xcc   :  { %317 = vrot.lane.b32.xlu0 %v2404_v52, %s2038_s17  ;;  %319 = vrot.lane.b32.xlu1 %v2422_v59, %s2038_s17  ;;  %v232_v52 = vld [vmem:[#allocation2 + $0x120] sm:$0xff]  ;;  %v359_v59 = vld [vmem:[#allocation2 + $0x111] sm:$0xff] }
  0xcd   :  { %v257_v53 = vpack.c.bf16 %v232_v52, %v2433_v63  ;;  %v300_v58 = vpack.c.bf16 %v233_v57, %v232_v52  ;;  %v369_v62 = vpack.c.bf16 %v359_v59, %v358_v61  ;;  %v418_v54 = vpack.c.bf16 %v360_v0, %v359_v59 }
  0xd0   :  { %386 = vrot.lane.b32.xlu0 %v366_v35, %s2039_s22  ;;  %388 = vrot.lane.b32.xlu1 %v367_v36, %s2039_s22 }
  0xd4   :  { %435 = vrot.lane.b32.xlu0 %v415_v38, %s2040_s23  ;;  %437 = vrot.lane.b32.xlu1 %v416_v39, %s2040_s23 }
  0xd8   :  { %472 = vrot.lane.b32.xlu0 %v367_v36, %s2041_s26  ;;  %474 = vrot.lane.b32.xlu1 %v368_v41, %s2041_s26 }
  0xdc   :  { %541 = vrot.lane.b32.xlu0 %v521_v46, %s2042_s29  ;;  %543 = vrot.lane.b32.xlu1 %v522_v49, %s2042_s29 }
  0xe0   :  { %590 = vrot.lane.b32.xlu0 %v570_v51, %s2043_s9  ;;  %592 = vrot.lane.b32.xlu1 %v571_v47, %s2043_s9 }
  0xe4   :  { %627 = vrot.lane.b32.xlu0 %v522_v49, %s2044_s10  ;;  %278 = vrot.lane.b32.xlu1 %v256_v60, %s2037_s0  ;;  %v361_v60 = vld [vmem:[#allocation2 + $0x131] sm:$0xff] }
  0xe5   :  { %v461_v63 = vpack.c.bf16 %v361_v60, %v360_v0 }
  0xe8   :  { %629 = vrot.lane.b32.xlu0 %v523_v55, %s2044_s10  ;;  %280 = vrot.lane.b32.xlu1 %v257_v53, %s2037_s0 }
  0xec   :  { %323 = vrot.lane.b32.xlu1 %v300_v58, %s2038_s17  ;;  %321 = vrot.lane.b32.xlu0 %v2437_v2, %s2038_s17 }
  0xf0   :  { %392 = vrot.lane.b32.xlu1 %v369_v62, %s2039_s22  ;;  %390 = vrot.lane.b32.xlu0 %v368_v41, %s2039_s22  ;;  %s2047_s22 = smov 40  }
  0xf4   :  { %441 = vrot.lane.b32.xlu1 %v418_v54, %s2040_s23  ;;  %439 = vrot.lane.b32.xlu0 %v417_v56, %s2040_s23 }
  0xf8   :  { %478 = vrot.lane.b32.xlu1 %v461_v63, %s2041_s26  ;;  %476 = vrot.lane.b32.xlu0 %v369_v62, %s2041_s26  ;;  %s2048_s26 = smov 64  }
  0xf9   :  { %v269_v2 = vpop.permute.xlu1 %268 }
  0xfa   :  { %292 = vst.msk [vmem:[#allocation3 + $0x8] sm:$0xff] %vm290_vm3, %v269_v2  ;;  %v267_v5 = vpop.permute.xlu0 %266 }
  0xfb   :  { %291 = vst.msk [vmem:[#allocation3] sm:$0xff] %vm290_vm3, %v267_v5 }
  0xfc   :  { %547 = vrot.lane.b32.xlu1 %v524_v6, %s2042_s29  ;;  %545 = vrot.lane.b32.xlu0 %v523_v55, %s2042_s29 }
  0xfe   :  { %v312_v8 = vpop.permute.xlu1 %311  ;;  %v310_v9 = vpop.permute.xlu0 %309 }
  0xff   :  { %335 = vst.msk [vmem:[#allocation3 + $0x8] sm:$0xff] %vm333_vm4, %v312_v8  ;;  %334 = vst.msk [vmem:[#allocation3] sm:$0xff] %vm333_vm4, %v310_v9 }
 0x100   :  { %596 = vrot.lane.b32.xlu1 %v573_v10, %s2043_s9  ;;  %594 = vrot.lane.b32.xlu0 %v572_v11, %s2043_s9  ;;  %s2053_s9 = smov 112  }
 0x102   :  { %v381_v13 = vpop.permute.xlu1 %380  ;;  %v379_v14 = vpop.permute.xlu0 %378 }
 0x103   :  { %404 = vst.msk [vmem:[#allocation3 + $0x8] sm:$0xff] %vm402_vm5, %v381_v13  ;;  %403 = vst.msk [vmem:[#allocation3] sm:$0xff] %vm402_vm5, %v379_v14 }
 0x104   :  { %633 = vrot.lane.b32.xlu1 %v616_v15, %s2044_s10  ;;  %631 = vrot.lane.b32.xlu0 %v524_v6, %s2044_s10 }
 0x106   :  { %v430_v16 = vpop.permute.xlu1 %429  ;;  %v428_v17 = vpop.permute.xlu0 %427 }
 0x107   :  { %453 = vst.msk [vmem:[#allocation3 + $0x8] sm:$0xff] %vm451_vm6, %v430_v16  ;;  %452 = vst.msk [vmem:[#allocation3] sm:$0xff] %vm451_vm6, %v428_v17 }
 0x10a   :  { %v467_v18 = vpop.permute.xlu1 %466  ;;  %v465_v19 = vpop.permute.xlu0 %464 }
 0x10b   :  { %490 = vst.msk [vmem:[#allocation3 + $0x8] sm:$0xff] %vm488_vm7, %v467_v18  ;;  %489 = vst.msk [vmem:[#allocation3] sm:$0xff] %vm488_vm7, %v465_v19 }
 0x10e   :  { %v536_v20 = vpop.permute.xlu1 %535  ;;  %v534_v21 = vpop.permute.xlu0 %533 }
 0x10f   :  { %559 = vst.msk [vmem:[#allocation3 + $0x8] sm:$0xff] %vm557_vm8, %v536_v20  ;;  %558 = vst.msk [vmem:[#allocation3] sm:$0xff] %vm557_vm8, %v534_v21 }
 0x112   :  { %v585_v22 = vpop.permute.xlu1 %584  ;;  %v583_v23 = vpop.permute.xlu0 %582 }
 0x113   :  { %608 = vst.msk [vmem:[#allocation3 + $0x8] sm:$0xff] %vm606_vm9, %v585_v22  ;;  %607 = vst.msk [vmem:[#allocation3] sm:$0xff] %vm606_vm9, %v583_v23 }
 0x116   :  { %v271_v24 = vpop.permute.xlu1 %270  ;;  %v620_v25 = vpop.permute.xlu0 %619 }
 0x117   :  { %293 = vst.msk [vmem:[#allocation3 + $0x10] sm:$0xff] %vm290_vm3, %v271_v24 }
 0x118   :  { %644 = vst.msk [vmem:[#allocation3] sm:$0xff] %vm643_vm10, %v620_v25 }
 0x11a   :  { %v273_v26 = vpop.permute.xlu1 %272  ;;  %v622_v27 = vpop.permute.xlu0 %621 }
 0x11b   :  { %294 = vst.msk [vmem:[#allocation3 + $0x18] sm:$0xff] %vm290_vm3, %v273_v26 }
 0x11c   :  { %645 = vst.msk [vmem:[#allocation3 + $0x8] sm:$0xff] %vm643_vm10, %v622_v27 }
 0x11e   :  { %v316_v28 = vpop.permute.xlu1 %315  ;;  %v314_v29 = vpop.permute.xlu0 %313 }
 0x11f   :  { %v652_v30 = vld [vmem:[#allocation3] sm:$0xff]  ;;  %337 = vst.msk [vmem:[#allocation3 + $0x18] sm:$0xff] %vm333_vm4, %v316_v28  ;;  %336 = vst.msk [vmem:[#allocation3 + $0x10] sm:$0xff] %vm333_vm4, %v314_v29 }
 0x120   :  { %1958 = vmatprep.mubr.msk.bf16.mxu0 %vm680_vm11, %v652_v30 }
 0x122   :  { %v385_v31 = vpop.permute.xlu1 %384  ;;  %v383_v32 = vpop.permute.xlu0 %382 }
 0x123   :  { %v653_v33 = vld [vmem:[#allocation3 + $0x8] sm:$0xff]  ;;  %406 = vst.msk [vmem:[#allocation3 + $0x18] sm:$0xff] %vm402_vm5, %v385_v31  ;;  %405 = vst.msk [vmem:[#allocation3 + $0x10] sm:$0xff] %vm402_vm5, %v383_v32 }
 0x124   :  { %1959 = vmatmul.mubr.msk.bf16.vlgmr.msra.gmra.mrb[0].mxu0 %vm680_vm11, %v653_v33 }
 0x126   :  { %v434_v34 = vpop.permute.xlu1 %433  ;;  %v432_v35 = vpop.permute.xlu0 %431 }
 0x127   :  { %455 = vst.msk [vmem:[#allocation3 + $0x18] sm:$0xff] %vm451_vm6, %v434_v34  ;;  %454 = vst.msk [vmem:[#allocation3 + $0x10] sm:$0xff] %vm451_vm6, %v432_v35 }
 0x12a   :  { %v471_v36 = vpop.permute.xlu1 %470  ;;  %v469_v37 = vpop.permute.xlu0 %468 }
 0x12b   :  { %492 = vst.msk [vmem:[#allocation3 + $0x18] sm:$0xff] %vm488_vm7, %v471_v36  ;;  %491 = vst.msk [vmem:[#allocation3 + $0x10] sm:$0xff] %vm488_vm7, %v469_v37 }
 0x12e   :  { %v540_v38 = vpop.permute.xlu1 %539  ;;  %v538_v39 = vpop.permute.xlu0 %537 }
 0x12f   :  { %561 = vst.msk [vmem:[#allocation3 + $0x18] sm:$0xff] %vm557_vm8, %v540_v38  ;;  %560 = vst.msk [vmem:[#allocation3 + $0x10] sm:$0xff] %vm557_vm8, %v538_v39 }
 0x132   :  { %v589_v40 = vpop.permute.xlu1 %588  ;;  %v587_v41 = vpop.permute.xlu0 %586 }
 0x133   :  { %610 = vst.msk [vmem:[#allocation3 + $0x18] sm:$0xff] %vm606_vm9, %v589_v40  ;;  %609 = vst.msk [vmem:[#allocation3 + $0x10] sm:$0xff] %vm606_vm9, %v587_v41 }
 0x136   :  { %v275_v43 = vpop.permute.xlu1 %274  ;;  %v624_v44 = vpop.permute.xlu0 %623 }
 0x137   :  { %295 = vst.msk [vmem:[#allocation3 + $0x20] sm:$0xff] %vm290_vm3, %v275_v43 }
 0x138   :  { %646 = vst.msk [vmem:[#allocation3 + $0x10] sm:$0xff] %vm643_vm10, %v624_v44 }
 0x13a   :  { %v277_v45 = vpop.permute.xlu1 %276  ;;  %v626_v42 = vpop.permute.xlu0 %625 }
 0x13b   :  { %296 = vst.msk [vmem:[#allocation3 + $0x28] sm:$0xff] %vm290_vm3, %v277_v45 }
 0x13c   :  { %647 = vst.msk [vmem:[#allocation3 + $0x18] sm:$0xff] %vm643_vm10, %v626_v42 }
 0x13e   :  { %v320_v46 = vpop.permute.xlu1 %319  ;;  %v318_v49 = vpop.permute.xlu0 %317 }
 0x13f   :  { %v654_v50 = vld [vmem:[#allocation3 + $0x10] sm:$0xff]  ;;  %339 = vst.msk [vmem:[#allocation3 + $0x28] sm:$0xff] %vm333_vm4, %v320_v46  ;;  %338 = vst.msk [vmem:[#allocation3 + $0x20] sm:$0xff] %vm333_vm4, %v318_v49 }
 0x140   :  { %1962 = vmatprep.mubr.msk.bf16.mxu0 %vm680_vm11, %v654_v50 }
 0x142   :  { %v389_v51 = vpop.permute.xlu1 %388  ;;  %v387_v47 = vpop.permute.xlu0 %386 }
 0x143   :  { %v655_v52 = vld [vmem:[#allocation3 + $0x18] sm:$0xff]  ;;  %408 = vst.msk [vmem:[#allocation3 + $0x28] sm:$0xff] %vm402_vm5, %v389_v51  ;;  %407 = vst.msk [vmem:[#allocation3 + $0x20] sm:$0xff] %vm402_vm5, %v387_v47 }
 0x144   :  { %1963 = vmatmul.mubr.msk.bf16.gmra.mrb[4].mxu0 %vm680_vm11, %v655_v52 }
 0x146   :  { %v438_v48 = vpop.permute.xlu1 %437  ;;  %v436_v53 = vpop.permute.xlu0 %435 }
 0x147   :  { %457 = vst.msk [vmem:[#allocation3 + $0x28] sm:$0xff] %vm451_vm6, %v438_v48  ;;  %456 = vst.msk [vmem:[#allocation3 + $0x20] sm:$0xff] %vm451_vm6, %v436_v53 }
 0x14a   :  { %v475_v55 = vpop.permute.xlu1 %474  ;;  %v473_v57 = vpop.permute.xlu0 %472 }
 0x14b   :  { %494 = vst.msk [vmem:[#allocation3 + $0x28] sm:$0xff] %vm488_vm7, %v475_v55  ;;  %493 = vst.msk [vmem:[#allocation3 + $0x20] sm:$0xff] %vm488_vm7, %v473_v57 }
 0x14e   :  { %v544_v58 = vpop.permute.xlu1 %543  ;;  %v542_v59 = vpop.permute.xlu0 %541 }
 0x14f   :  { %563 = vst.msk [vmem:[#allocation3 + $0x28] sm:$0xff] %vm557_vm8, %v544_v58  ;;  %562 = vst.msk [vmem:[#allocation3 + $0x20] sm:$0xff] %vm557_vm8, %v542_v59 }
 0x152   :  { %v593_v61 = vpop.permute.xlu1 %592  ;;  %v591_v62 = vpop.permute.xlu0 %590 }
 0x153   :  { %612 = vst.msk [vmem:[#allocation3 + $0x28] sm:$0xff] %vm606_vm9, %v593_v61  ;;  %611 = vst.msk [vmem:[#allocation3 + $0x20] sm:$0xff] %vm606_vm9, %v591_v62 }
 0x156   :  { %v279_v0 = vpop.permute.xlu1 %278  ;;  %v628_v54 = vpop.permute.xlu0 %627 }
 0x157   :  { %297 = vst.msk [vmem:[#allocation3 + $0x30] sm:$0xff] %vm290_vm3, %v279_v0 }
 0x158   :  { %648 = vst.msk [vmem:[#allocation3 + $0x20] sm:$0xff] %vm643_vm10, %v628_v54 }
 0x15a   :  { %v281_v56 = vpop.permute.xlu1 %280  ;;  %v630_v60 = vpop.permute.xlu0 %629 }
 0x15b   :  { %298 = vst.msk [vmem:[#allocation3 + $0x38] sm:$0xff] %vm290_vm3, %v281_v56  ;;  %vm1310_vm3 = vcmask 523712  }
 0x15c   :  { %649 = vst.msk [vmem:[#allocation3 + $0x28] sm:$0xff] %vm643_vm10, %v630_v60 }
 0x15e   :  { %v324_v63 = vpop.permute.xlu1 %323  ;;  %v322_v1 = vpop.permute.xlu0 %321 }
 0x15f   :  { %v656_v2 = vld [vmem:[#allocation3 + $0x20] sm:$0xff]  ;;  %341 = vst.msk [vmem:[#allocation3 + $0x38] sm:$0xff] %vm333_vm4, %v324_v63  ;;  %340 = vst.msk [vmem:[#allocation3 + $0x30] sm:$0xff] %vm333_vm4, %v322_v1  ;;  %vm1379_vm4 = vcmask 195712  }
 0x160   :  { %1966 = vmatprep.mubr.msk.bf16.mxu0 %vm680_vm11, %v656_v2 }
 0x162   :  { %v393_v4 = vpop.permute.xlu1 %392  ;;  %v391_v5 = vpop.permute.xlu0 %390 }
 0x163   :  { %v657_v6 = vld [vmem:[#allocation3 + $0x28] sm:$0xff]  ;;  %410 = vst.msk [vmem:[#allocation3 + $0x38] sm:$0xff] %vm402_vm5, %v393_v4  ;;  %409 = vst.msk [vmem:[#allocation3 + $0x30] sm:$0xff] %vm402_vm5, %v391_v5  ;;  %vm1428_vm5 = vcmask 392512  }
 0x164   :  { %1967 = vmatmul.mubr.msk.bf16.gmra.mrb[8].mxu0 %vm680_vm11, %v657_v6 }
 0x166   :  { %v442_v7 = vpop.permute.xlu1 %441  ;;  %v440_v8 = vpop.permute.xlu0 %439 }
 0x167   :  { %459 = vst.msk [vmem:[#allocation3 + $0x38] sm:$0xff] %vm451_vm6, %v442_v7  ;;  %458 = vst.msk [vmem:[#allocation3 + $0x30] sm:$0xff] %vm451_vm6, %v440_v8  ;;  %vm1465_vm6 = vcmask 589312  }
 0x16a   :  { %v479_v9 = vpop.permute.xlu1 %478  ;;  %v477_v10 = vpop.permute.xlu0 %476 }
 0x16b   :  { %496 = vst.msk [vmem:[#allocation3 + $0x38] sm:$0xff] %vm488_vm7, %v479_v9  ;;  %495 = vst.msk [vmem:[#allocation3 + $0x30] sm:$0xff] %vm488_vm7, %v477_v10  ;;  %vm1518_vm7 = vcmask 588800  }
 0x16e   :  { %v548_v11 = vpop.permute.xlu1 %547  ;;  %v546_v12 = vpop.permute.xlu0 %545 }
 0x16f   :  { %565 = vst.msk [vmem:[#allocation3 + $0x38] sm:$0xff] %vm557_vm8, %v548_v11  ;;  %564 = vst.msk [vmem:[#allocation3 + $0x30] sm:$0xff] %vm557_vm8, %v546_v12  ;;  %vm1860_vm8 = vcmask 654912  }
 0x172   :  { %v597_v13 = vpop.permute.xlu1 %596  ;;  %v595_v14 = vpop.permute.xlu0 %594 }
 0x173   :  { %614 = vst.msk [vmem:[#allocation3 + $0x38] sm:$0xff] %vm606_vm9, %v597_v13  ;;  %613 = vst.msk [vmem:[#allocation3 + $0x30] sm:$0xff] %vm606_vm9, %v595_v14  ;;  %vm1866_vm9 = vcmask 720512  }
 0x176   :  { %v634_v15 = vpop.permute.xlu1 %633  ;;  %v632_v16 = vpop.permute.xlu0 %631 }
 0x177   :  { %651 = vst.msk [vmem:[#allocation3 + $0x38] sm:$0xff] %vm643_vm10, %v634_v15  ;;  %650 = vst.msk [vmem:[#allocation3 + $0x30] sm:$0xff] %vm643_vm10, %v632_v16  ;;  %vm1872_vm10 = vcmask 786112  }
 0x17e   :  { %v658_v17 = vld [vmem:[#allocation3 + $0x30] sm:$0xff]  ;;  %v659_v18 = vld [vmem:[#allocation3 + $0x38] sm:$0xff] }
 0x17f   :  { %1970 = vmatprep.mubr.msk.bf16.mxu0 %vm680_vm11, %v658_v17 }
 0x180   :  { %1971 = vmatmul.mubr.msk.bf16.gmra.mrb[12].mxu0 %vm680_vm11, %v659_v18  ;;  %vm1878_vm11 = vcmask 851712  }
 0x1f7   :  { %v2624_v19 = vpop.f32.mrb[0].mxu0 }
 0x1f8   :  { %v2626_v20 = vpop.f32.mrb[1].mxu0  ;;  %v812_v26 = vsel %vm808_vm12, %v2624_v19, 0.0 }
 0x1f9   :  { %v2628_v21 = vpop.f32.mrb[2].mxu0  ;;  %v809_v23 = vsel %vm808_vm12, %v2626_v20, 0.0 }
 0x1fa   :  { %v2630_v22 = vpop.f32.mrb[3].mxu0  ;;  %v814_v28 = vsel %vm808_vm12, %v2628_v21, 0.0 }
 0x1fb   :  { %v810_v24 = vsel %vm808_vm12, %v2630_v22, 0.0 }
 0x1fc   :  { %v811_v25 = vadd.f32 %v810_v24, %v809_v23 }
 0x1fe   :  { %v813_v27 = vadd.f32 %v812_v26, %v811_v25 }
 0x200   :  { %v815_v29 = vadd.f32 %v814_v28, %v813_v27 }
 0x217   :  { %v2640_v30 = vpop.f32.mrb[4].mxu0 }
 0x218   :  { %v2642_v31 = vpop.f32.mrb[5].mxu0  ;;  %v820_v38 = vsel %vm808_vm12, %v2640_v30, 0.0 }
 0x219   :  { %v816_v32 = vsel %vm808_vm12, %v2642_v31, 0.0  ;;  %v2646_v33 = vpop.f32.mrb[6].mxu0 }
 0x21a   :  { %v817_v34 = vadd.f32 %v816_v32, %v815_v29  ;;  %v2648_v35 = vpop.f32.mrb[7].mxu0  ;;  %v822_v40 = vsel %vm808_vm12, %v2646_v33, 0.0 }
 0x21b   :  { %v818_v36 = vsel %vm808_vm12, %v2648_v35, 0.0 }
 0x21c   :  { %v819_v37 = vadd.f32 %v818_v36, %v817_v34 }
 0x21e   :  { %v821_v39 = vadd.f32 %v820_v38, %v819_v37 }
 0x220   :  { %v823_v41 = vadd.f32 %v822_v40, %v821_v39 }
 0x237   :  { %v1968_v43 = vpop.f32.mrb[8].mxu0 }
 0x238   :  { %v775_v44 = vpop.f32.mrb[9].mxu0  ;;  %v828_v47 = vsel %vm808_vm12, %v1968_v43, 0.0 }
 0x239   :  { %v824_v45 = vsel %vm808_vm12, %v775_v44, 0.0  ;;  %v1969_v42 = vpop.f32.mrb[10].mxu0 }
 0x23a   :  { %v825_v46 = vadd.f32 %v824_v45, %v823_v41  ;;  %v778_v49 = vpop.f32.mrb[11].mxu0  ;;  %v830_v48 = vsel %vm808_vm12, %v1969_v42, 0.0 }
 0x23b   :  { %v826_v50 = vsel %vm808_vm12, %v778_v49, 0.0 }
 0x23c   :  { %v827_v51 = vadd.f32 %v826_v50, %v825_v46 }
 0x23e   :  { %v829_v52 = vadd.f32 %v828_v47, %v827_v51 }
 0x240   :  { %v831_v53 = vadd.f32 %v830_v48, %v829_v52 }
 0x253   :  { %v1972_v55 = vpop.f32.mrb[12].mxu0 }
 0x254   :  { %v791_v57 = vpop.f32.mrb[13].mxu0  ;;  %v836_v56 = vsel %vm808_vm12, %v1972_v55, 0.0 }
 0x255   :  { %v832_v58 = vsel %vm808_vm12, %v791_v57, 0.0  ;;  %v1973_v59 = vpop.f32.mrb[14].mxu0 }
 0x256   :  { %v833_v61 = vadd.f32 %v832_v58, %v831_v53  ;;  %v794_v62 = vpop.f32.mrb[15].mxu0  ;;  %v838_v63 = vsel %vm808_vm12, %v1973_v59, 0.0 }
 0x257   :  { %v834_v0 = vsel %vm808_vm12, %v794_v62, 0.0 }
 0x258   :  { %v835_v54 = vadd.f32 %v834_v0, %v833_v61 }
 0x25a   :  { %v837_v60 = vadd.f32 %v836_v56, %v835_v54 }
 0x25c   :  { %v839_v1 = vadd.f32 %v838_v63, %v837_v60 }
 0x25e   :  { %v840_v2 = vrot.slane %v839_v1, 4 }
 0x260   :  { %v841_v4 = vadd.f32 %v840_v2, %v839_v1 }
 0x262   :  { %v842_v3 = vrot.slane %v841_v4, 2 }
 0x264   :  { %v843_v5 = vadd.f32 %v842_v3, %v841_v4 }
 0x266   :  { %v844_v6 = vrot.slane %v843_v5, 1 }
 0x268   :  { %v845_v7 = vadd.f32 %v844_v6, %v843_v5 }
 0x26a   :  { %v846_v8 = vmul.f32 0.0078125, %v845_v7 }
 0x26c   :  { %v2705_v9 = vsub.f32 %v2626_v20, %v846_v8  ;;  %v2708_v10 = vsub.f32 %v2630_v22, %v846_v8  ;;  %v2711_v11 = vsub.f32 %v2624_v19, %v846_v8  ;;  %v2714_v12 = vsub.f32 %v2628_v21, %v846_v8 }
 0x26d   :  { %v2717_v13 = vsub.f32 %v2642_v31, %v846_v8  ;;  %v2720_v14 = vsub.f32 %v2648_v35, %v846_v8  ;;  %v2723_v15 = vsub.f32 %v2640_v30, %v846_v8  ;;  %v2726_v16 = vsub.f32 %v2646_v33, %v846_v8 }
 0x26e   :  { %v2728_v17 = vsub.f32 %v775_v44, %v846_v8  ;;  %v2730_v18 = vsub.f32 %v778_v49, %v846_v8  ;;  %v2732_v19 = vsub.f32 %v1968_v43, %v846_v8  ;;  %v2734_v20 = vsub.f32 %v1969_v42, %v846_v8 }
 0x26f   :  { %v2736_v21 = vsub.f32 %v791_v57, %v846_v8  ;;  %v2738_v22 = vsub.f32 %v794_v62, %v846_v8  ;;  %v2740_v23 = vsub.f32 %v1972_v55, %v846_v8  ;;  %v2742_v24 = vsub.f32 %v1973_v59, %v846_v8 }
 0x270   :  { %v863_v25 = vmul.f32 %v2705_v9, %v2705_v9  ;;  %v864_v26 = vmul.f32 %v2708_v10, %v2708_v10  ;;  %v865_v27 = vmul.f32 %v2711_v11, %v2711_v11  ;;  %v866_v28 = vmul.f32 %v2714_v12, %v2714_v12 }
 0x271   :  { %v867_v32 = vmul.f32 %v2717_v13, %v2717_v13  ;;  %v868_v35 = vmul.f32 %v2720_v14, %v2720_v14  ;;  %v869_v38 = vmul.f32 %v2723_v15, %v2723_v15  ;;  %v870_v41 = vmul.f32 %v2726_v16, %v2726_v16 }
 0x272   :  { %v879_v29 = vsel %vm808_vm12, %v863_v25, 0.0  ;;  %v880_v30 = vsel %vm808_vm12, %v864_v26, 0.0  ;;  %v882_v33 = vsel %vm808_vm12, %v865_v27, 0.0  ;;  %v884_v36 = vsel %vm808_vm12, %v866_v28, 0.0 }
 0x273   :  { %v881_v31 = vadd.f32 %v880_v30, %v879_v29  ;;  %v886_v39 = vsel %vm808_vm12, %v867_v32, 0.0  ;;  %v888_v43 = vsel %vm808_vm12, %v868_v35, 0.0  ;;  %v871_v45 = vmul.f32 %v2728_v17, %v2728_v17 }
 0x274   :  { %v890_v42 = vsel %vm808_vm12, %v869_v38, 0.0  ;;  %v872_v49 = vmul.f32 %v2730_v18, %v2730_v18  ;;  %v892_v50 = vsel %vm808_vm12, %v870_v41, 0.0  ;;  %v873_v47 = vmul.f32 %v2732_v19, %v2732_v19 }
 0x275   :  { %v883_v34 = vadd.f32 %v882_v33, %v881_v31  ;;  %v894_v52 = vsel %vm808_vm12, %v871_v45, 0.0  ;;  %v874_v53 = vmul.f32 %v2734_v20, %v2734_v20  ;;  %v875_v58 = vmul.f32 %v2736_v21, %v2736_v21 }
 0x276   :  { %v896_v55 = vsel %vm808_vm12, %v872_v49, 0.0  ;;  %v898_v59 = vsel %vm808_vm12, %v873_v47, 0.0  ;;  %v876_v62 = vmul.f32 %v2738_v22, %v2738_v22  ;;  %v877_v56 = vmul.f32 %v2740_v23, %v2740_v23 }
 0x277   :  { %v885_v37 = vadd.f32 %v884_v36, %v883_v34  ;;  %v900_v0 = vsel %vm808_vm12, %v874_v53, 0.0  ;;  %v902_v60 = vsel %vm808_vm12, %v875_v58, 0.0  ;;  %v878_v1 = vmul.f32 %v2742_v24, %v2742_v24  ;;  %v806_v34 = vld [vmem:[%s3262_s3] sm:$0x1]  ;;  %s2045_s3 = smov 48  }
 0x278   :  { %v904_v2 = vsel %vm808_vm12, %v876_v62, 0.0  ;;  %v906_v3 = vsel %vm808_vm12, %v877_v56, 0.0  ;;  %v920_v32 = vlaneseq }
 0x279   :  { %v887_v40 = vadd.f32 %v886_v39, %v885_v37  ;;  %v908_v6 = vsel %vm808_vm12, %v878_v1, 0.0 }
 0x27a   :  { %v2792_v33 = vshrl.u32 %v920_v32, 7 }
 0x27b   :  { %v889_v44 = vadd.f32 %v888_v43, %v887_v40 }
 0x27c   :  { %v922_v35 = vsub.s32 0, %v2792_v33 }
 0x27d   :  { %v891_v46 = vadd.f32 %v890_v42, %v889_v44  ;;  %v1913_v44 = vld [vmem:[%s3263_s4] ss:$0 sm:$0xff] }
 0x27f   :  { %v893_v51 = vadd.f32 %v892_v50, %v891_v46 }
 0x281   :  { %v895_v48 = vadd.f32 %v894_v52, %v893_v51 }
 0x283   :  { %v897_v57 = vadd.f32 %v896_v55, %v895_v48 }
 0x285   :  { %v899_v61 = vadd.f32 %v898_v59, %v897_v57 }
 0x287   :  { %v901_v54 = vadd.f32 %v900_v0, %v899_v61 }
 0x289   :  { %v903_v63 = vadd.f32 %v902_v60, %v901_v54 }
 0x28b   :  { %v905_v4 = vadd.f32 %v904_v2, %v903_v63 }
 0x28d   :  { %v907_v5 = vadd.f32 %v906_v3, %v905_v4 }
 0x28f   :  { %v909_v7 = vadd.f32 %v908_v6, %v907_v5 }
 0x291   :  { %v910_v8 = vrot.slane %v909_v7, 4 }
 0x293   :  { %v911_v25 = vadd.f32 %v910_v8, %v909_v7  ;;  %v1036_v8 = vld [vmem:[#allocation4] sm:$0xff] }
 0x295   :  { %v912_v26 = vrot.slane %v911_v25, 2 }
 0x297   :  { %v913_v27 = vadd.f32 %v912_v26, %v911_v25 }
 0x299   :  { %v914_v28 = vrot.slane %v913_v27, 1 }
 0x29b   :  { %v915_v29 = vadd.f32 %v914_v28, %v913_v27 }
 0x29d   :  { %v916_v30 = vmul.f32 0.0078125, %v915_v29 }
 0x29f   :  { %v917_v31 = vadd.f32 1e-05, %v916_v30 }
 0x2a1   :  { %2031 = vrsqrt.f32 %v917_v31 }
 0x2ab   :  { %v2032_v36 = vpop.eup %2031 }
 0x2ac   :  { %v919_v37 = vmul.f32 %v2032_v36, %v806_v34 }
 0x2ae   :  { %v923_v38 = vrot.slane %v919_v37, %v922_v35 }
 0x2b0   :  { %v924_v39 = vmul.f32 %v923_v38, %v2705_v9  ;;  %v925_v40 = vmul.f32 %v923_v38, %v2708_v10  ;;  %v926_v41 = vmul.f32 %v923_v38, %v2711_v11  ;;  %v927_v43 = vmul.f32 %v923_v38, %v2714_v12 }
 0x2b1   :  { %v928_v45 = vmul.f32 %v923_v38, %v2717_v13  ;;  %v929_v42 = vmul.f32 %v923_v38, %v2720_v14  ;;  %v930_v46 = vmul.f32 %v923_v38, %v2723_v15  ;;  %v931_v49 = vmul.f32 %v923_v38, %v2726_v16 }
 0x2b2   :  { %v932_v9 = vmul.f32 %v923_v38, %v2728_v17  ;;  %v933_v10 = vmul.f32 %v923_v38, %v2730_v18  ;;  %v934_v11 = vmul.f32 %v923_v38, %v2732_v19  ;;  %v935_v12 = vmul.f32 %v923_v38, %v2734_v20 }
 0x2b3   :  { %v936_v50 = vmul.f32 %v923_v38, %v2736_v21  ;;  %v937_v51 = vmul.f32 %v923_v38, %v2738_v22  ;;  %v938_v13 = vmul.f32 %v923_v38, %v2740_v23  ;;  %v939_v14 = vmul.f32 %v923_v38, %v2742_v24 }
 0x2b4   :  { %v946_v47 = vadd.f32 %v1913_v44, %v924_v39  ;;  %v947_v15 = vadd.f32 %v1913_v44, %v925_v40  ;;  %v948_v52 = vadd.f32 %v1913_v44, %v926_v41  ;;  %v949_v16 = vadd.f32 %v1913_v44, %v927_v43  ;;  %v1046_v43 = vld [vmem:[#allocation4 + $0xa0] sm:$0xff] }
 0x2b5   :  { %v950_v48 = vadd.f32 %v1913_v44, %v928_v45  ;;  %v951_v17 = vadd.f32 %v1913_v44, %v929_v42  ;;  %v952_v53 = vadd.f32 %v1913_v44, %v930_v46  ;;  %v953_v18 = vadd.f32 %v1913_v44, %v931_v49 }
 0x2b6   :  { %v954_v55 = vadd.f32 %v1913_v44, %v932_v9  ;;  %v955_v19 = vadd.f32 %v1913_v44, %v933_v10  ;;  %v956_v57 = vadd.f32 %v1913_v44, %v934_v11  ;;  %v957_v20 = vadd.f32 %v1913_v44, %v935_v12 }
 0x2b7   :  { %v958_v58 = vadd.f32 %v1913_v44, %v936_v50  ;;  %v959_v21 = vadd.f32 %v1913_v44, %v937_v51  ;;  %v960_v59 = vadd.f32 %v1913_v44, %v938_v13  ;;  %v961_v22 = vadd.f32 %v1913_v44, %v939_v14  ;;  %v1164_v44 = vld [vmem:[#allocation4 + $0x1] sm:$0xff] }
 0x2b8   :  { %v962_v61 = vmax.f32 %v946_v47, 0.0  ;;  %v963_v23 = vmax.f32 %v947_v15, 0.0  ;;  %v964_v62 = vmax.f32 %v948_v52, 0.0  ;;  %v965_v24 = vmax.f32 %v949_v16, 0.0 }
 0x2b9   :  { %v966_v0 = vmax.f32 %v950_v48, 0.0  ;;  %v967_v54 = vmax.f32 %v951_v17, 0.0  ;;  %v968_v56 = vmax.f32 %v952_v53, 0.0  ;;  %v969_v60 = vmax.f32 %v953_v18, 0.0 }
 0x2ba   :  { %v970_v63 = vmax.f32 %v954_v55, 0.0  ;;  %v971_v1 = vmax.f32 %v955_v19, 0.0  ;;  %v972_v2 = vmax.f32 %v956_v57, 0.0  ;;  %v973_v4 = vmax.f32 %v957_v20, 0.0  ;;  %1022 = vst.msk [vmem:[#allocation4 + $0x31] sm:$0xff] %vm808_vm12, %v964_v62  ;;  %1023 = vst.msk [vmem:[#allocation4 + $0x41] sm:$0xff] %vm808_vm12, %v965_v24 }
 0x2bb   :  { %1020 = vst.msk [vmem:[#allocation4 + $0x11] sm:$0xff] %vm808_vm12, %v962_v61  ;;  %1021 = vst.msk [vmem:[#allocation4 + $0x21] sm:$0xff] %vm808_vm12, %v963_v23  ;;  %v974_v3 = vmax.f32 %v958_v58, 0.0  ;;  %v975_v5 = vmax.f32 %v959_v21, 0.0  ;;  %v976_v6 = vmax.f32 %v960_v59, 0.0  ;;  %v977_v7 = vmax.f32 %v961_v22, 0.0 }
 0x2bc   :  { %1027 = vst.msk [vmem:[#allocation4 + $0x81] sm:$0xff] %vm808_vm12, %v969_v60  ;;  %1024 = vst.msk [vmem:[#allocation4 + $0x51] sm:$0xff] %vm808_vm12, %v966_v0  ;;  %v2026_v55 = vld [vmem:[%s3264_s2] sm:$0xff]   ;;  %v2027_v20 = vld [vmem:[%s3264_s2 + $0x8] sm:$0xff]  }
 0x2bd   :  { %1025 = vst.msk [vmem:[#allocation4 + $0x61] sm:$0xff] %vm808_vm12, %v967_v54  ;;  %1026 = vst.msk [vmem:[#allocation4 + $0x71] sm:$0xff] %vm808_vm12, %v968_v56  ;;  %v1319_v57 = vld [vmem:[#allocation4 + $0x2] sm:$0xff]  ;;  %1974 = vmatprep.subr.bf16.mxu1 %v2026_v55  ;;  %v2028_v59 = vld [vmem:[%s3264_s2 + $0x10] sm:$0xff]  }
 0x2be   :  { %1028 = vst.msk [vmem:[#allocation4 + $0xb1] sm:$0xff] %vm808_vm12, %v970_v63  ;;  %1029 = vst.msk [vmem:[#allocation4 + $0xc1] sm:$0xff] %vm808_vm12, %v971_v1  ;;  %1975 = vmatpush3.bf16.msra.mxu1 %v2026_v55  ;;  %v2029_v62 = vld [vmem:[%s3264_s2 + $0x18] sm:$0xff]   ;;  %v2030_v54 = vld [vmem:[%s3264_s2 + $0x20] ss:$0 sps:$4 sm:$0xff]  }
 0x2bf   :  { %1030 = vst.msk [vmem:[#allocation4 + $0xd1] sm:$0xff] %vm808_vm12, %v972_v2  ;;  %1031 = vst.msk [vmem:[#allocation4 + $0xe1] sm:$0xff] %vm808_vm12, %v973_v4  ;;  %1976 = vmatprep.subr.bf16.mxu1 %v2027_v20  ;;  %v1545_v1 = vsel %vm1543_vm14, %v2030_v54, 0  ;;  %v1045_v4 = vld [vmem:[#allocation4 + $0x90] sm:$0xff] }
 0x2c0   :  { %1032 = vst.msk [vmem:[#allocation4 + $0xf1] sm:$0xff] %vm808_vm12, %v974_v3  ;;  %1033 = vst.msk [vmem:[#allocation4 + $0x101] sm:$0xff] %vm808_vm12, %v975_v5 }
 0x2c1   :  { %1034 = vst.msk [vmem:[#allocation4 + $0x111] sm:$0xff] %vm808_vm12, %v976_v6  ;;  %1035 = vst.msk [vmem:[#allocation4 + $0x121] sm:$0xff] %vm808_vm12, %v977_v7  ;;  %v1039_v25 = vld [vmem:[#allocation4 + $0x30] sm:$0xff]  ;;  %v1040_v26 = vld [vmem:[#allocation4 + $0x40] sm:$0xff] }
 0x2c2   :  { %v1037_v27 = vld [vmem:[#allocation4 + $0x10] sm:$0xff]  ;;  %v1073_v28 = vpack.c.bf16 %v1040_v26, %v1039_v25  ;;  %v1038_v29 = vld [vmem:[#allocation4 + $0x20] sm:$0xff]  ;;  %1977 = vmatpush3.bf16.msra.mxu1 %v2027_v20 }
 0x2c3   :  { %v2835_v30 = vld [vmem:[#allocation4 + $0x50] sm:$0xff]  ;;  %v1056_v31 = vpack.c.bf16 %v1037_v27, %v1036_v8  ;;  %v1072_v32 = vpack.c.bf16 %v1038_v29, %v1037_v27  ;;  %v1057_v36 = vpack.c.bf16 %v1039_v25, %v1038_v29  ;;  %v1166_v39 = vld [vmem:[#allocation4 + $0x21] sm:$0xff]  ;;  %1978 = vmatprep.subr.bf16.mxu1 %v2028_v59 }
 0x2c4   :  { %v1058_v34 = vpack.c.bf16 %v2835_v30, %v1040_v26  ;;  %1090 = vrot.lane.b32.xlu1 %v1073_v28, %s2038_s17  ;;  %v2843_v37 = vld [vmem:[#allocation4 + $0x60] sm:$0xff]  ;;  %v2845_v38 = vld [vmem:[#allocation4 + $0x70] sm:$0xff] }
 0x2c5   :  { %1064 = vst.msk [vmem:[#allocation5] sm:$0xff] %vm808_vm12, %v1056_v31  ;;  %1088 = vrot.lane.b32.xlu0 %v1072_v32, %s2038_s17  ;;  %1065 = vst.msk [vmem:[#allocation5 + $0x8] sm:$0xff] %vm808_vm12, %v1057_v36  ;;  %v1167_v40 = vld [vmem:[#allocation4 + $0x31] sm:$0xff]  ;;  %v2849_v41 = vpack.c.bf16 %v2845_v38, %v2843_v37  ;;  %v2857_v46 = vld [vmem:[#allocation4 + $0xc0] sm:$0xff]  ;;  %v1074_v56 = vpack.c.bf16 %v2843_v37, %v2835_v30 }
 0x2c6   :  { %1066 = vst.msk [vmem:[#allocation5 + $0x10] sm:$0xff] %vm808_vm12, %v1058_v34  ;;  %v1165_v45 = vld [vmem:[#allocation4 + $0x11] sm:$0xff]  ;;  %v1185_v9 = vpack.c.bf16 %v1167_v40, %v1166_v39  ;;  %v2861_v10 = vld [vmem:[#allocation4 + $0xe0] sm:$0xff]  ;;  %1979 = vmatpush3.bf16.msra.mxu1 %v2028_v59 }
 0x2c7   :  { %1067 = vst.msk [vmem:[#allocation5 + $0x18] sm:$0xff] %vm808_vm12, %v2849_v41  ;;  %v2855_v42 = vld [vmem:[#allocation4 + $0xb0] sm:$0xff]  ;;  %v1184_v51 = vpack.c.bf16 %v1165_v45, %v1164_v44  ;;  %v1168_v13 = vld [vmem:[#allocation4 + $0x41] sm:$0xff]  ;;  %v1233_v48 = vpack.c.bf16 %v1166_v39, %v1165_v45  ;;  %1980 = vmatprep.subr.bf16.mxu1 %v2029_v62 }
 0x2c8   :  { %1133 = vrot.lane.b32.xlu1 %v1058_v34, %s2045_s3  ;;  %v2859_v49 = vld [vmem:[#allocation4 + $0xd0] sm:$0xff]  ;;  %v1060_v50 = vpack.c.bf16 %v2855_v42, %v1046_v43  ;;  %v2881_v47 = vld [vmem:[#allocation4 + $0x100] sm:$0xff]  ;;  %v1234_v15 = vpack.c.bf16 %v1168_v13, %v1167_v40 }
 0x2c9   :  { %1131 = vrot.lane.b32.xlu0 %v1057_v36, %s2045_s3  ;;  %v2863_v11 = vld [vmem:[#allocation4 + $0xf0] sm:$0xff]  ;;  %v2867_v12 = vpack.c.bf16 %v2859_v49, %v2857_v46  ;;  %v1321_v18 = vld [vmem:[#allocation4 + $0x22] sm:$0xff]  ;;  %v1077_v40 = vpack.c.bf16 %v2861_v10, %v2859_v49 }
 0x2ca   :  { %v2872_v14 = vpack.c.bf16 %v2863_v11, %v2861_v10  ;;  %1068 = vst.msk [vmem:[#allocation5 + $0x20] sm:$0xff] %vm808_vm12, %v1060_v50  ;;  %v1078_v52 = vpack.c.bf16 %v2881_v47, %v2863_v11  ;;  %v2885_v16 = vld [vmem:[#allocation4 + $0x110] sm:$0xff]  ;;  %v1323_v23 = vld [vmem:[#allocation4 + $0x42] sm:$0xff]  ;;  %1981 = vmatpush3.bf16.msra.mxu1 %v2029_v62 }
 0x2cb   :  { %1069 = vst.msk [vmem:[#allocation5 + $0x28] sm:$0xff] %vm808_vm12, %v2867_v12  ;;  %v2887_v17 = vld [vmem:[#allocation4 + $0x51] sm:$0xff]  ;;  %v2891_v53 = vpack.c.bf16 %v2885_v16, %v2881_v47  ;;  %v1044_v60 = vld [vmem:[#allocation4 + $0x80] sm:$0xff]  ;;  %2001 = vmatprep.subr.msk.bf16.mxu1 %vm1543_vm14, %v2030_v54  ;;  %vm1896_vm14 = vcmask 1048512  }
 0x2cc   :  { %1202 = vrot.lane.b32.xlu1 %v1185_v9, %s2042_s29  ;;  %1070 = vst.msk [vmem:[#allocation5 + $0x30] sm:$0xff] %vm808_vm12, %v2872_v14  ;;  %v1186_v19 = vpack.c.bf16 %v2887_v17, %v1168_v13  ;;  %v1322_v58 = vld [vmem:[#allocation4 + $0x32] sm:$0xff]  ;;  %v1075_v2 = vpack.c.bf16 %v1044_v60, %v2845_v38  ;;  %v1121_v5 = vpack.c.bf16 %v1045_v4, %v1044_v60  ;;  %v1170_v6 = vld [vmem:[#allocation4 + $0x61] sm:$0xff] }
 0x2cd   :  { %1200 = vrot.lane.b32.xlu0 %v1184_v51, %s2042_s29  ;;  %1071 = vst.msk [vmem:[#allocation5 + $0x38] sm:$0xff] %vm808_vm12, %v2891_v53  ;;  %v1320_v21 = vld [vmem:[#allocation4 + $0x12] sm:$0xff]  ;;  %v1340_v22 = vpack.c.bf16 %v1322_v58, %v1321_v18  ;;  %v1389_v24 = vpack.c.bf16 %v1323_v23, %v1322_v58  ;;  %v1172_v25 = vld [vmem:[#allocation4 + $0x81] sm:$0xff]  ;;  %v1235_v27 = vpack.c.bf16 %v1170_v6, %v2887_v17 }
 0x2ce   :  { %v1339_v61 = vpack.c.bf16 %v1320_v21, %v1319_v57  ;;  %v1388_v0 = vpack.c.bf16 %v1321_v18, %v1320_v21  ;;  %v1324_v63 = vld [vmem:[#allocation4 + $0x52] sm:$0xff]  ;;  %1983 = vmatpush3.bf16.msra.mxu1 %v1545_v1  ;;  %v1325_v30 = vld [vmem:[#allocation4 + $0x62] sm:$0xff]  ;;  %v1076_v38 = vpack.c.bf16 %v2857_v46, %v2855_v42 }
 0x2cf   :  { %v1341_v3 = vpack.c.bf16 %v1324_v63, %v1323_v23  ;;  %v1171_v7 = vld [vmem:[#allocation4 + $0x71] sm:$0xff]  ;;  %v1327_v34 = vld [vmem:[#allocation4 + $0x82] sm:$0xff]  ;;  %v1390_v37 = vpack.c.bf16 %v1325_v30, %v1324_v63 }
 0x2d0   :  { %1251 = vrot.lane.b32.xlu1 %v1234_v15, %s2044_s10  ;;  %v1187_v8 = vpack.c.bf16 %v1171_v7, %v1170_v6  ;;  %v1236_v26 = vpack.c.bf16 %v1172_v25, %v1171_v7  ;;  %v1173_v28 = vld [vmem:[#allocation4 + $0x91] sm:$0xff]  ;;  %v1176_v43 = vld [vmem:[#allocation4 + $0xc1] sm:$0xff] }
 0x2d1   :  { %1249 = vrot.lane.b32.xlu0 %v1233_v48, %s2044_s10  ;;  %v1282_v29 = vpack.c.bf16 %v1173_v28, %v1172_v25  ;;  %v1326_v31 = vld [vmem:[#allocation4 + $0x72] sm:$0xff]  ;;  %v1174_v45 = vld [vmem:[#allocation4 + $0xa1] sm:$0xff] }
 0x2d2   :  { %v1342_v32 = vpack.c.bf16 %v1326_v31, %v1325_v30  ;;  %v1391_v36 = vpack.c.bf16 %v1327_v34, %v1326_v31  ;;  %v1328_v39 = vld [vmem:[#allocation4 + $0x92] sm:$0xff]  ;;  %v1178_v50 = vld [vmem:[#allocation4 + $0xe1] sm:$0xff] }
 0x2d3   :  { %v1177_v44 = vld [vmem:[#allocation4 + $0xd1] sm:$0xff]  ;;  %v1333_v55 = vld [vmem:[#allocation4 + $0xe2] sm:$0xff] }
 0x2d4   :  { %1288 = vrot.lane.b32.xlu1 %v1186_v19, %s2046_s18  ;;  %v1175_v42 = vld [vmem:[#allocation4 + $0xb1] sm:$0xff]  ;;  %v1189_v46 = vpack.c.bf16 %v1177_v44, %v1176_v43  ;;  %v1238_v49 = vpack.c.bf16 %v1178_v50, %v1177_v44  ;;  %v1054_v20 = vld [vmem:[#allocation4 + $0x120] sm:$0xff] }
 0x2d5   :  { %1286 = vrot.lane.b32.xlu0 %v1185_v9, %s2046_s18  ;;  %v1188_v9 = vpack.c.bf16 %v1175_v42, %v1174_v45  ;;  %v1237_v10 = vpack.c.bf16 %v1176_v43, %v1175_v42  ;;  %v1179_v51 = vld [vmem:[#allocation4 + $0xf1] sm:$0xff]  ;;  %v1079_v21 = vpack.c.bf16 %v1054_v20, %v2885_v16  ;;  %v1180_v23 = vld [vmem:[#allocation4 + $0x101] sm:$0xff] }
 0x2d6   :  { %v1190_v13 = vpack.c.bf16 %v1179_v51, %v1178_v50  ;;  %v1332_v15 = vld [vmem:[#allocation4 + $0xd2] sm:$0xff]  ;;  %v1182_v47 = vld [vmem:[#allocation4 + $0x121] sm:$0xff]  ;;  %v1239_v16 = vpack.c.bf16 %v1180_v23, %v1179_v51 }
 0x2d7   :  { %v1330_v48 = vld [vmem:[#allocation4 + $0xb2] sm:$0xff]  ;;  %v1335_v54 = vld [vmem:[#allocation4 + $0x102] sm:$0xff] }
 0x2d8   :  { %1357 = vrot.lane.b32.xlu1 %v1340_v22, %s2040_s23  ;;  %v1334_v58 = vld [vmem:[#allocation4 + $0xf2] sm:$0xff]  ;;  %v1337_v1 = vld [vmem:[#allocation4 + $0x122] sm:$0xff] }
 0x2d9   :  { %1355 = vrot.lane.b32.xlu0 %v1339_v61, %s2040_s23  ;;  %v1345_v59 = vpack.c.bf16 %v1334_v58, %v1333_v55  ;;  %v1181_v62 = vld [vmem:[#allocation4 + $0x111] sm:$0xff] }
 0x2da   :  { %v1191_v11 = vpack.c.bf16 %v1181_v62, %v1180_v23  ;;  %v1338_v6 = vld [vmem:[#allocation4 + $0x132] sm:$0xff] }
 0x2dc   :  { %1406 = vrot.lane.b32.xlu1 %v1389_v24, %s2047_s22  ;;  %v1183_v24 = vld [vmem:[#allocation4 + $0x131] sm:$0xff] }
 0x2dd   :  { %1404 = vrot.lane.b32.xlu0 %v1388_v0, %s2047_s22  ;;  %v1283_v0 = vpack.c.bf16 %v1183_v24, %v1182_v47 }
 0x2e0   :  { %1092 = vrot.lane.b32.xlu1 %v1074_v56, %s2038_s17  ;;  %v1336_v56 = vld [vmem:[#allocation4 + $0x112] sm:$0xff] }
 0x2e1   :  { %1441 = vrot.lane.b32.xlu0 %v1340_v22, %s2048_s26  ;;  %v1055_v22 = vld [vmem:[#allocation4 + $0x130] sm:$0xff]  ;;  %v1346_v60 = vpack.c.bf16 %v1336_v56, %v1335_v54  ;;  %v1395_v4 = vpack.c.bf16 %v1337_v1, %v1336_v56 }
 0x2e2   :  { %v1122_v61 = vpack.c.bf16 %v1055_v22, %v1054_v20 }
 0x2e4   :  { %1094 = vrot.lane.b32.xlu1 %v1075_v2, %s2038_s17 }
 0x2e5   :  { %1443 = vrot.lane.b32.xlu0 %v1341_v3, %s2048_s26 }
 0x2e8   :  { %1137 = vrot.lane.b32.xlu1 %v1121_v5, %s2045_s3  ;;  %v1394_v5 = vpack.c.bf16 %v1335_v54, %v1334_v58 }
 0x2e9   :  { %1135 = vrot.lane.b32.xlu0 %v2849_v41, %s2045_s3  ;;  %v1437_v41 = vpack.c.bf16 %v1328_v39, %v1327_v34 }
 0x2ec   :  { %1206 = vrot.lane.b32.xlu1 %v1187_v8, %s2042_s29 }
 0x2ed   :  { %1204 = vrot.lane.b32.xlu0 %v1186_v19, %s2042_s29  ;;  %v1393_v19 = vpack.c.bf16 %v1333_v55, %v1332_v15 }
 0x2f0   :  { %1255 = vrot.lane.b32.xlu1 %v1236_v26, %s2044_s10 }
 0x2f1   :  { %1253 = vrot.lane.b32.xlu0 %v1235_v27, %s2044_s10 }
 0x2f4   :  { %1292 = vrot.lane.b32.xlu1 %v1282_v29, %s2046_s18 }
 0x2f5   :  { %1290 = vrot.lane.b32.xlu0 %v1187_v8, %s2046_s18  ;;  %v1438_v8 = vpack.c.bf16 %v1338_v6, %v1337_v1 }
 0x2f8   :  { %1361 = vrot.lane.b32.xlu1 %v1342_v32, %s2040_s23 }
 0x2f9   :  { %1359 = vrot.lane.b32.xlu0 %v1341_v3, %s2040_s23 }
 0x2fc   :  { %1410 = vrot.lane.b32.xlu1 %v1391_v36, %s2047_s22 }
 0x2fd   :  { %1408 = vrot.lane.b32.xlu0 %v1390_v37, %s2047_s22 }
 0x300   :  { %1096 = vrot.lane.b32.xlu1 %v1076_v38, %s2038_s17 }
 0x301   :  { %1445 = vrot.lane.b32.xlu0 %v1342_v32, %s2048_s26 }
 0x304   :  { %1098 = vrot.lane.b32.xlu1 %v1077_v40, %s2038_s17 }
 0x305   :  { %1447 = vrot.lane.b32.xlu0 %v1437_v41, %s2048_s26 }
 0x308   :  { %1141 = vrot.lane.b32.xlu1 %v2872_v14, %s2045_s3  ;;  %v1331_v14 = vld [vmem:[#allocation4 + $0xc2] sm:$0xff] }
 0x309   :  { %1139 = vrot.lane.b32.xlu0 %v2867_v12, %s2045_s3  ;;  %v1329_v12 = vld [vmem:[#allocation4 + $0xa2] sm:$0xff]  ;;  %v1344_v17 = vpack.c.bf16 %v1332_v15, %v1331_v14  ;;  %v1392_v57 = vpack.c.bf16 %v1331_v14, %v1330_v48 }
 0x30a   :  { %v1343_v18 = vpack.c.bf16 %v1330_v48, %v1329_v12 }
 0x30c   :  { %1210 = vrot.lane.b32.xlu1 %v1189_v46, %s2042_s29 }
 0x30d   :  { %1208 = vrot.lane.b32.xlu0 %v1188_v9, %s2042_s29 }
 0x310   :  { %1259 = vrot.lane.b32.xlu1 %v1238_v49, %s2044_s10 }
 0x311   :  { %1257 = vrot.lane.b32.xlu0 %v1237_v10, %s2044_s10 }
 0x314   :  { %1296 = vrot.lane.b32.xlu1 %v1190_v13, %s2046_s18 }
 0x315   :  { %1294 = vrot.lane.b32.xlu0 %v1189_v46, %s2046_s18 }
 0x318   :  { %1365 = vrot.lane.b32.xlu1 %v1344_v17, %s2040_s23 }
 0x319   :  { %1363 = vrot.lane.b32.xlu0 %v1343_v18, %s2040_s23 }
 0x31c   :  { %1414 = vrot.lane.b32.xlu1 %v1393_v19, %s2047_s22 }
 0x31d   :  { %1412 = vrot.lane.b32.xlu0 %v1392_v57, %s2047_s22 }
 0x320   :  { %1100 = vrot.lane.b32.xlu1 %v1078_v52, %s2038_s17  ;;  %v1240_v52 = vpack.c.bf16 %v1182_v47, %v1181_v62 }
 0x321   :  { %1449 = vrot.lane.b32.xlu0 %v1344_v17, %s2048_s26 }
 0x324   :  { %1102 = vrot.lane.b32.xlu1 %v1079_v21, %s2038_s17 }
 0x325   :  { %1451 = vrot.lane.b32.xlu0 %v1345_v59, %s2048_s26 }
 0x328   :  { %1145 = vrot.lane.b32.xlu1 %v1122_v61, %s2045_s3 }
 0x329   :  { %1143 = vrot.lane.b32.xlu0 %v2891_v53, %s2045_s3 }
 0x32c   :  { %1214 = vrot.lane.b32.xlu1 %v1191_v11, %s2042_s29 }
 0x32d   :  { %1212 = vrot.lane.b32.xlu0 %v1190_v13, %s2042_s29 }
 0x330   :  { %1263 = vrot.lane.b32.xlu1 %v1240_v52, %s2044_s10 }
 0x331   :  { %1261 = vrot.lane.b32.xlu0 %v1239_v16, %s2044_s10 }
 0x334   :  { %1300 = vrot.lane.b32.xlu1 %v1283_v0, %s2046_s18 }
 0x335   :  { %1298 = vrot.lane.b32.xlu0 %v1191_v11, %s2046_s18 }
 0x336   :  { %v1091_v53 = vpop.permute.xlu1 %1090 }
 0x337   :  { %1114 = vst.msk [vmem:[#allocation5 + $0x8] sm:$0xff] %vm1112_vm15, %v1091_v53  ;;  %v1089_v63 = vpop.permute.xlu0 %1088 }
 0x338   :  { %1113 = vst.msk [vmem:[#allocation5] sm:$0xff] %vm1112_vm15, %v1089_v63  ;;  %1369 = vrot.lane.b32.xlu1 %v1346_v60, %s2040_s23 }
 0x339   :  { %1367 = vrot.lane.b32.xlu0 %v1345_v59, %s2040_s23 }
 0x33a   :  { %v1134_v2 = vpop.permute.xlu1 %1133 }
 0x33b   :  { %1157 = vst.msk [vmem:[#allocation5 + $0x8] sm:$0xff] %vm1155_vm0, %v1134_v2  ;;  %v1132_v3 = vpop.permute.xlu0 %1131 }
 0x33c   :  { %1156 = vst.msk [vmem:[#allocation5] sm:$0xff] %vm1155_vm0, %v1132_v3  ;;  %1418 = vrot.lane.b32.xlu1 %v1395_v4, %s2047_s22 }
 0x33d   :  { %1416 = vrot.lane.b32.xlu0 %v1394_v5, %s2047_s22 }
 0x33e   :  { %v1203_v7 = vpop.permute.xlu1 %1202 }
 0x33f   :  { %1226 = vst.msk [vmem:[#allocation5 + $0x8] sm:$0xff] %vm1224_vm1, %v1203_v7  ;;  %v1201_v25 = vpop.permute.xlu0 %1200 }
 0x340   :  { %1225 = vst.msk [vmem:[#allocation5] sm:$0xff] %vm1224_vm1, %v1201_v25  ;;  %1455 = vrot.lane.b32.xlu1 %v1438_v8, %s2048_s26 }
 0x341   :  { %1453 = vrot.lane.b32.xlu0 %v1346_v60, %s2048_s26 }
 0x342   :  { %v1252_v26 = vpop.permute.xlu1 %1251 }
 0x343   :  { %1275 = vst.msk [vmem:[#allocation5 + $0x8] sm:$0xff] %vm1273_vm2, %v1252_v26  ;;  %v1250_v27 = vpop.permute.xlu0 %1249 }
 0x344   :  { %1274 = vst.msk [vmem:[#allocation5] sm:$0xff] %vm1273_vm2, %v1250_v27 }
 0x346   :  { %v1289_v28 = vpop.permute.xlu1 %1288 }
 0x347   :  { %1312 = vst.msk [vmem:[#allocation5 + $0x8] sm:$0xff] %vm1310_vm3, %v1289_v28  ;;  %v1287_v29 = vpop.permute.xlu0 %1286 }
 0x348   :  { %1311 = vst.msk [vmem:[#allocation5] sm:$0xff] %vm1310_vm3, %v1287_v29 }
 0x34a   :  { %v1358_v30 = vpop.permute.xlu1 %1357 }
 0x34b   :  { %1381 = vst.msk [vmem:[#allocation5 + $0x8] sm:$0xff] %vm1379_vm4, %v1358_v30  ;;  %v1356_v31 = vpop.permute.xlu0 %1355 }
 0x34c   :  { %1380 = vst.msk [vmem:[#allocation5] sm:$0xff] %vm1379_vm4, %v1356_v31 }
 0x34e   :  { %v1407_v32 = vpop.permute.xlu1 %1406 }
 0x34f   :  { %1430 = vst.msk [vmem:[#allocation5 + $0x8] sm:$0xff] %vm1428_vm5, %v1407_v32  ;;  %v1405_v34 = vpop.permute.xlu0 %1404 }
 0x350   :  { %1429 = vst.msk [vmem:[#allocation5] sm:$0xff] %vm1428_vm5, %v1405_v34 }
 0x352   :  { %v1093_v36 = vpop.permute.xlu1 %1092 }
 0x353   :  { %1115 = vst.msk [vmem:[#allocation5 + $0x10] sm:$0xff] %vm1112_vm15, %v1093_v36  ;;  %v1442_v37 = vpop.permute.xlu0 %1441 }
 0x354   :  { %1466 = vst.msk [vmem:[#allocation5] sm:$0xff] %vm1465_vm6, %v1442_v37 }
 0x356   :  { %v1095_v38 = vpop.permute.xlu1 %1094 }
 0x357   :  { %1116 = vst.msk [vmem:[#allocation5 + $0x18] sm:$0xff] %vm1112_vm15, %v1095_v38  ;;  %v1444_v39 = vpop.permute.xlu0 %1443 }
 0x358   :  { %1467 = vst.msk [vmem:[#allocation5 + $0x8] sm:$0xff] %vm1465_vm6, %v1444_v39 }
 0x35a   :  { %v1138_v40 = vpop.permute.xlu1 %1137 }
 0x35b   :  { %1159 = vst.msk [vmem:[#allocation5 + $0x18] sm:$0xff] %vm1155_vm0, %v1138_v40  ;;  %v1136_v41 = vpop.permute.xlu0 %1135  ;;  %v1474_v43 = vld [vmem:[#allocation5] sm:$0xff] }
 0x35c   :  { %1158 = vst.msk [vmem:[#allocation5 + $0x10] sm:$0xff] %vm1155_vm0, %v1136_v41  ;;  %1984 = vmatprep.mubr.msk.bf16.mxu1 %vm1518_vm7, %v1474_v43 }
 0x35e   :  { %v1207_v44 = vpop.permute.xlu1 %1206 }
 0x35f   :  { %1228 = vst.msk [vmem:[#allocation5 + $0x18] sm:$0xff] %vm1224_vm1, %v1207_v44  ;;  %v1205_v45 = vpop.permute.xlu0 %1204  ;;  %v1475_v42 = vld [vmem:[#allocation5 + $0x8] sm:$0xff] }
 0x360   :  { %1227 = vst.msk [vmem:[#allocation5 + $0x10] sm:$0xff] %vm1224_vm1, %v1205_v45  ;;  %1985 = vmatmul.mubr.msk.bf16.vlgmr.msra.gmra.mrb[0].mxu1 %vm1518_vm7, %v1475_v42 }
 0x362   :  { %v1256_v46 = vpop.permute.xlu1 %1255 }
 0x363   :  { %1277 = vst.msk [vmem:[#allocation5 + $0x18] sm:$0xff] %vm1273_vm2, %v1256_v46  ;;  %v1254_v9 = vpop.permute.xlu0 %1253 }
 0x364   :  { %1276 = vst.msk [vmem:[#allocation5 + $0x10] sm:$0xff] %vm1273_vm2, %v1254_v9 }
 0x366   :  { %v1293_v50 = vpop.permute.xlu1 %1292 }
 0x367   :  { %1314 = vst.msk [vmem:[#allocation5 + $0x18] sm:$0xff] %vm1310_vm3, %v1293_v50  ;;  %v1291_v49 = vpop.permute.xlu0 %1290 }
 0x368   :  { %1313 = vst.msk [vmem:[#allocation5 + $0x10] sm:$0xff] %vm1310_vm3, %v1291_v49 }
 0x36a   :  { %v1362_v10 = vpop.permute.xlu1 %1361 }
 0x36b   :  { %1383 = vst.msk [vmem:[#allocation5 + $0x18] sm:$0xff] %vm1379_vm4, %v1362_v10  ;;  %v1360_v51 = vpop.permute.xlu0 %1359 }
 0x36c   :  { %1382 = vst.msk [vmem:[#allocation5 + $0x10] sm:$0xff] %vm1379_vm4, %v1360_v51 }
 0x36e   :  { %v1411_v13 = vpop.permute.xlu1 %1410 }
 0x36f   :  { %1432 = vst.msk [vmem:[#allocation5 + $0x18] sm:$0xff] %vm1428_vm5, %v1411_v13  ;;  %v1409_v14 = vpop.permute.xlu0 %1408 }
 0x370   :  { %1431 = vst.msk [vmem:[#allocation5 + $0x10] sm:$0xff] %vm1428_vm5, %v1409_v14 }
 0x372   :  { %v1097_v15 = vpop.permute.xlu1 %1096 }
 0x373   :  { %1117 = vst.msk [vmem:[#allocation5 + $0x20] sm:$0xff] %vm1112_vm15, %v1097_v15  ;;  %v1446_v12 = vpop.permute.xlu0 %1445 }
 0x374   :  { %1468 = vst.msk [vmem:[#allocation5 + $0x10] sm:$0xff] %vm1465_vm6, %v1446_v12 }
 0x376   :  { %v1099_v48 = vpop.permute.xlu1 %1098 }
 0x377   :  { %1118 = vst.msk [vmem:[#allocation5 + $0x28] sm:$0xff] %vm1112_vm15, %v1099_v48  ;;  %v1448_v17 = vpop.permute.xlu0 %1447 }
 0x378   :  { %1469 = vst.msk [vmem:[#allocation5 + $0x18] sm:$0xff] %vm1465_vm6, %v1448_v17 }
 0x37a   :  { %v1142_v18 = vpop.permute.xlu1 %1141 }
 0x37b   :  { %1161 = vst.msk [vmem:[#allocation5 + $0x28] sm:$0xff] %vm1155_vm0, %v1142_v18  ;;  %v1140_v55 = vpop.permute.xlu0 %1139  ;;  %v1476_v19 = vld [vmem:[#allocation5 + $0x10] sm:$0xff] }
 0x37c   :  { %1160 = vst.msk [vmem:[#allocation5 + $0x20] sm:$0xff] %vm1155_vm0, %v1140_v55  ;;  %1988 = vmatprep.mubr.msk.bf16.mxu1 %vm1518_vm7, %v1476_v19 }
 0x37e   :  { %v1211_v57 = vpop.permute.xlu1 %1210 }
 0x37f   :  { %1230 = vst.msk [vmem:[#allocation5 + $0x28] sm:$0xff] %vm1224_vm1, %v1211_v57  ;;  %v1209_v20 = vpop.permute.xlu0 %1208  ;;  %v1477_v58 = vld [vmem:[#allocation5 + $0x18] sm:$0xff] }
 0x380   :  { %1229 = vst.msk [vmem:[#allocation5 + $0x20] sm:$0xff] %vm1224_vm1, %v1209_v20  ;;  %1989 = vmatmul.mubr.msk.bf16.gmra.mrb[4].mxu1 %vm1518_vm7, %v1477_v58 }
 0x382   :  { %v1260_v21 = vpop.permute.xlu1 %1259 }
 0x383   :  { %1279 = vst.msk [vmem:[#allocation5 + $0x28] sm:$0xff] %vm1273_vm2, %v1260_v21  ;;  %v1258_v59 = vpop.permute.xlu0 %1257 }
 0x384   :  { %1278 = vst.msk [vmem:[#allocation5 + $0x20] sm:$0xff] %vm1273_vm2, %v1258_v59 }
 0x386   :  { %v1297_v22 = vpop.permute.xlu1 %1296 }
 0x387   :  { %1316 = vst.msk [vmem:[#allocation5 + $0x28] sm:$0xff] %vm1310_vm3, %v1297_v22  ;;  %v1295_v61 = vpop.permute.xlu0 %1294 }
 0x388   :  { %1315 = vst.msk [vmem:[#allocation5 + $0x20] sm:$0xff] %vm1310_vm3, %v1295_v61 }
 0x38a   :  { %v1366_v23 = vpop.permute.xlu1 %1365 }
 0x38b   :  { %1385 = vst.msk [vmem:[#allocation5 + $0x28] sm:$0xff] %vm1379_vm4, %v1366_v23  ;;  %v1364_v62 = vpop.permute.xlu0 %1363 }
 0x38c   :  { %1384 = vst.msk [vmem:[#allocation5 + $0x20] sm:$0xff] %vm1379_vm4, %v1364_v62 }
 0x38e   :  { %v1415_v11 = vpop.permute.xlu1 %1414 }
 0x38f   :  { %1434 = vst.msk [vmem:[#allocation5 + $0x28] sm:$0xff] %vm1428_vm5, %v1415_v11  ;;  %v1413_v47 = vpop.permute.xlu0 %1412 }
 0x390   :  { %1433 = vst.msk [vmem:[#allocation5 + $0x20] sm:$0xff] %vm1428_vm5, %v1413_v47 }
 0x392   :  { %v1101_v52 = vpop.permute.xlu1 %1100 }
 0x393   :  { %1119 = vst.msk [vmem:[#allocation5 + $0x30] sm:$0xff] %vm1112_vm15, %v1101_v52  ;;  %v1450_v16 = vpop.permute.xlu0 %1449 }
 0x394   :  { %1470 = vst.msk [vmem:[#allocation5 + $0x20] sm:$0xff] %vm1465_vm6, %v1450_v16 }
 0x396   :  { %v1103_v24 = vpop.permute.xlu1 %1102 }
 0x397   :  { %1120 = vst.msk [vmem:[#allocation5 + $0x38] sm:$0xff] %vm1112_vm15, %v1103_v24  ;;  %v1452_v0 = vpop.permute.xlu0 %1451 }
 0x398   :  { %1471 = vst.msk [vmem:[#allocation5 + $0x28] sm:$0xff] %vm1465_vm6, %v1452_v0 }
 0x39a   :  { %v1146_v54 = vpop.permute.xlu1 %1145 }
 0x39b   :  { %1163 = vst.msk [vmem:[#allocation5 + $0x38] sm:$0xff] %vm1155_vm0, %v1146_v54  ;;  %v1144_v56 = vpop.permute.xlu0 %1143  ;;  %v1478_v53 = vld [vmem:[#allocation5 + $0x20] sm:$0xff] }
 0x39c   :  { %1162 = vst.msk [vmem:[#allocation5 + $0x30] sm:$0xff] %vm1155_vm0, %v1144_v56  ;;  %1992 = vmatprep.mubr.msk.bf16.mxu1 %vm1518_vm7, %v1478_v53 }
 0x39e   :  { %v1215_v60 = vpop.permute.xlu1 %1214 }
 0x39f   :  { %1232 = vst.msk [vmem:[#allocation5 + $0x38] sm:$0xff] %vm1224_vm1, %v1215_v60  ;;  %v1213_v63 = vpop.permute.xlu0 %1212  ;;  %v1479_v1 = vld [vmem:[#allocation5 + $0x28] sm:$0xff] }
 0x3a0   :  { %1231 = vst.msk [vmem:[#allocation5 + $0x30] sm:$0xff] %vm1224_vm1, %v1213_v63  ;;  %1993 = vmatmul.mubr.msk.bf16.gmra.mrb[8].mxu1 %vm1518_vm7, %v1479_v1 }
 0x3a2   :  { %v1264_v2 = vpop.permute.xlu1 %1263 }
 0x3a3   :  { %1281 = vst.msk [vmem:[#allocation5 + $0x38] sm:$0xff] %vm1273_vm2, %v1264_v2  ;;  %v1262_v4 = vpop.permute.xlu0 %1261 }
 0x3a4   :  { %1280 = vst.msk [vmem:[#allocation5 + $0x30] sm:$0xff] %vm1273_vm2, %v1262_v4 }
 0x3a6   :  { %v1301_v3 = vpop.permute.xlu1 %1300 }
 0x3a7   :  { %1318 = vst.msk [vmem:[#allocation5 + $0x38] sm:$0xff] %vm1310_vm3, %v1301_v3  ;;  %v1299_v5 = vpop.permute.xlu0 %1298 }
 0x3a8   :  { %1317 = vst.msk [vmem:[#allocation5 + $0x30] sm:$0xff] %vm1310_vm3, %v1299_v5 }
 0x3aa   :  { %v1370_v6 = vpop.permute.xlu1 %1369 }
 0x3ab   :  { %1387 = vst.msk [vmem:[#allocation5 + $0x38] sm:$0xff] %vm1379_vm4, %v1370_v6  ;;  %v1368_v7 = vpop.permute.xlu0 %1367 }
 0x3ac   :  { %1386 = vst.msk [vmem:[#allocation5 + $0x30] sm:$0xff] %vm1379_vm4, %v1368_v7 }
 0x3ae   :  { %v1419_v8 = vpop.permute.xlu1 %1418 }
 0x3af   :  { %1436 = vst.msk [vmem:[#allocation5 + $0x38] sm:$0xff] %vm1428_vm5, %v1419_v8  ;;  %v1417_v25 = vpop.permute.xlu0 %1416 }
 0x3b0   :  { %1435 = vst.msk [vmem:[#allocation5 + $0x30] sm:$0xff] %vm1428_vm5, %v1417_v25 }
 0x3b2   :  { %v1456_v26 = vpop.permute.xlu1 %1455 }
 0x3b3   :  { %1473 = vst.msk [vmem:[#allocation5 + $0x38] sm:$0xff] %vm1465_vm6, %v1456_v26  ;;  %v1454_v27 = vpop.permute.xlu0 %1453 }
 0x3b4   :  { %1472 = vst.msk [vmem:[#allocation5 + $0x30] sm:$0xff] %vm1465_vm6, %v1454_v27 }
 0x3ba   :  { %v1481_v28 = vld [vmem:[#allocation5 + $0x38] sm:$0xff] }
 0x3bb   :  { %v1480_v29 = vld [vmem:[#allocation5 + $0x30] sm:$0xff] }
 0x3bc   :  { %1996 = vmatprep.mubr.msk.bf16.mxu1 %vm1518_vm7, %v1480_v29 }
 0x3bd   :  { %1997 = vmatmul.mubr.msk.bf16.gmra.mrb[12].mxu1 %vm1518_vm7, %v1481_v28 }
 0x433   :  { %v1986_v30 = vpop.f32.mrb[0].mxu1 }
 0x434   :  { %v1581_v31 = vpop.f32.mrb[1].mxu1  ;;  %v1649_v39 = vsel %vm808_vm12, %v1986_v30, 0.0 }
 0x435   :  { %v1987_v32 = vpop.f32.mrb[2].mxu1  ;;  %v1646_v36 = vsel %vm808_vm12, %v1581_v31, 0.0 }
 0x436   :  { %v1584_v34 = vpop.f32.mrb[3].mxu1  ;;  %v1651_v41 = vsel %vm808_vm12, %v1987_v32, 0.0 }
 0x437   :  { %v1647_v37 = vsel %vm808_vm12, %v1584_v34, 0.0 }
 0x438   :  { %v1648_v38 = vadd.f32 %v1647_v37, %v1646_v36 }
 0x43a   :  { %v1650_v40 = vadd.f32 %v1649_v39, %v1648_v38 }
 0x43c   :  { %v1652_v43 = vadd.f32 %v1651_v41, %v1650_v40 }
 0x453   :  { %v1990_v44 = vpop.f32.mrb[4].mxu1 }
 0x454   :  { %v1597_v45 = vpop.f32.mrb[5].mxu1  ;;  %v1657_v51 = vsel %vm808_vm12, %v1990_v44, 0.0 }
 0x455   :  { %v1653_v42 = vsel %vm808_vm12, %v1597_v45, 0.0  ;;  %v1991_v46 = vpop.f32.mrb[6].mxu1 }
 0x456   :  { %v1654_v9 = vadd.f32 %v1653_v42, %v1652_v43  ;;  %v1600_v50 = vpop.f32.mrb[7].mxu1  ;;  %v1659_v14 = vsel %vm808_vm12, %v1991_v46, 0.0 }
 0x457   :  { %v1655_v49 = vsel %vm808_vm12, %v1600_v50, 0.0 }
 0x458   :  { %v1656_v10 = vadd.f32 %v1655_v49, %v1654_v9 }
 0x45a   :  { %v1658_v13 = vadd.f32 %v1657_v51, %v1656_v10 }
 0x45c   :  { %v1660_v15 = vadd.f32 %v1659_v14, %v1658_v13 }
 0x473   :  { %v1994_v12 = vpop.f32.mrb[8].mxu1 }
 0x474   :  { %v1613_v48 = vpop.f32.mrb[9].mxu1  ;;  %v1665_v58 = vsel %vm808_vm12, %v1994_v12, 0.0 }
 0x475   :  { %v1661_v17 = vsel %vm808_vm12, %v1613_v48, 0.0  ;;  %v1995_v18 = vpop.f32.mrb[10].mxu1 }
 0x476   :  { %v1662_v55 = vadd.f32 %v1661_v17, %v1660_v15  ;;  %v1616_v19 = vpop.f32.mrb[11].mxu1  ;;  %v1667_v59 = vsel %vm808_vm12, %v1995_v18, 0.0 }
 0x477   :  { %v1663_v57 = vsel %vm808_vm12, %v1616_v19, 0.0 }
 0x478   :  { %v1664_v20 = vadd.f32 %v1663_v57, %v1662_v55 }
 0x47a   :  { %v1666_v21 = vadd.f32 %v1665_v58, %v1664_v20 }
 0x47c   :  { %v1668_v22 = vadd.f32 %v1667_v59, %v1666_v21 }
 0x490   :  { %v1998_v61 = vpop.f32.mrb[12].mxu1 }
 0x491   :  { %v1629_v23 = vpop.f32.mrb[13].mxu1  ;;  %v1673_v0 = vsel %vm808_vm12, %v1998_v61, 0.0 }
 0x492   :  { %v1669_v62 = vsel %vm808_vm12, %v1629_v23, 0.0  ;;  %v1999_v11 = vpop.f32.mrb[14].mxu1 }
 0x493   :  { %v1670_v47 = vadd.f32 %v1669_v62, %v1668_v22  ;;  %v1632_v52 = vpop.f32.mrb[15].mxu1  ;;  %v1675_v56 = vsel %vm808_vm12, %v1999_v11, 0.0 }
 0x494   :  { %v1671_v16 = vsel %vm808_vm12, %v1632_v52, 0.0 }
 0x495   :  { %v1672_v24 = vadd.f32 %v1671_v16, %v1670_v47 }
 0x497   :  { %v1674_v54 = vadd.f32 %v1673_v0, %v1672_v24 }
 0x499   :  { %v1676_v53 = vadd.f32 %v1675_v56, %v1674_v54 }
 0x49b   :  { %v1677_v60 = vrot.slane %v1676_v53, 4 }
 0x49d   :  { %v1678_v63 = vadd.f32 %v1677_v60, %v1676_v53 }
 0x49f   :  { %v1679_v1 = vrot.slane %v1678_v63, 2 }
 0x4a1   :  { %v1680_v2 = vadd.f32 %v1679_v1, %v1678_v63 }
 0x4a3   :  { %v1681_v4 = vrot.slane %v1680_v2, 1 }
 0x4a5   :  { %v1682_v3 = vadd.f32 %v1681_v4, %v1680_v2 }
 0x4a7   :  { %v1683_v5 = vmul.f32 0.0078125, %v1682_v3 }
 0x4a9   :  { %v3073_v6 = vsub.f32 %v1581_v31, %v1683_v5  ;;  %v3075_v7 = vsub.f32 %v1584_v34, %v1683_v5  ;;  %v3077_v8 = vsub.f32 %v1986_v30, %v1683_v5  ;;  %v3079_v25 = vsub.f32 %v1987_v32, %v1683_v5 }
 0x4aa   :  { %v3081_v26 = vsub.f32 %v1597_v45, %v1683_v5  ;;  %v3083_v27 = vsub.f32 %v1600_v50, %v1683_v5  ;;  %v3085_v28 = vsub.f32 %v1990_v44, %v1683_v5  ;;  %v3087_v29 = vsub.f32 %v1991_v46, %v1683_v5 }
 0x4ab   :  { %v3089_v36 = vsub.f32 %v1613_v48, %v1683_v5  ;;  %v3091_v37 = vsub.f32 %v1616_v19, %v1683_v5  ;;  %v3093_v31 = vsub.f32 %v1994_v12, %v1683_v5  ;;  %v3095_v34 = vsub.f32 %v1995_v18, %v1683_v5 }
 0x4ac   :  { %v3097_v30 = vsub.f32 %v1629_v23, %v1683_v5  ;;  %v3099_v32 = vsub.f32 %v1632_v52, %v1683_v5  ;;  %v3101_v38 = vsub.f32 %v1998_v61, %v1683_v5  ;;  %v3103_v39 = vsub.f32 %v1999_v11, %v1683_v5 }
 0x4ad   :  { %v1700_v40 = vmul.f32 %v3073_v6, %v3073_v6  ;;  %v1701_v41 = vmul.f32 %v3075_v7, %v3075_v7  ;;  %v1702_v43 = vmul.f32 %v3077_v8, %v3077_v8  ;;  %v1703_v44 = vmul.f32 %v3079_v25, %v3079_v25 }
 0x4ae   :  { %v1704_v9 = vmul.f32 %v3081_v26, %v3081_v26  ;;  %v1705_v10 = vmul.f32 %v3083_v27, %v3083_v27  ;;  %v1706_v14 = vmul.f32 %v3085_v28, %v3085_v28  ;;  %v1707_v48 = vmul.f32 %v3087_v29, %v3087_v29 }
 0x4af   :  { %v1716_v45 = vsel %vm808_vm12, %v1700_v40, 0.0  ;;  %v1717_v42 = vsel %vm808_vm12, %v1701_v41, 0.0  ;;  %v1719_v50 = vsel %vm808_vm12, %v1702_v43, 0.0  ;;  %v1721_v51 = vsel %vm808_vm12, %v1703_v44, 0.0 }
 0x4b0   :  { %v1718_v46 = vadd.f32 %v1717_v42, %v1716_v45  ;;  %v1723_v15 = vsel %vm808_vm12, %v1704_v9, 0.0  ;;  %v1725_v17 = vsel %vm808_vm12, %v1705_v10, 0.0  ;;  %v1708_v55 = vmul.f32 %v3089_v36, %v3089_v36 }
 0x4b1   :  { %v1727_v19 = vsel %vm808_vm12, %v1706_v14, 0.0  ;;  %v1709_v20 = vmul.f32 %v3091_v37, %v3091_v37  ;;  %v1729_v58 = vsel %vm808_vm12, %v1707_v48, 0.0  ;;  %v1710_v59 = vmul.f32 %v3093_v31, %v3093_v31  ;;  %v3161_v14 = vld [vmem:[%s3266_s6] ss:$0 sm:$0xff] }
 0x4b2   :  { %v1720_v49 = vadd.f32 %v1719_v50, %v1718_v46  ;;  %v1731_v22 = vsel %vm808_vm12, %v1708_v55, 0.0  ;;  %v1711_v23 = vmul.f32 %v3095_v34, %v3095_v34  ;;  %v1712_v47 = vmul.f32 %v3097_v30, %v3097_v30 }
 0x4b3   :  { %v1733_v62 = vsel %vm808_vm12, %v1709_v20, 0.0  ;;  %v1735_v52 = vsel %vm808_vm12, %v1710_v59, 0.0  ;;  %v1713_v24 = vmul.f32 %v3099_v32, %v3099_v32  ;;  %v1714_v56 = vmul.f32 %v3101_v38, %v3101_v38 }
 0x4b4   :  { %v1722_v13 = vadd.f32 %v1721_v51, %v1720_v49  ;;  %v1737_v0 = vsel %vm808_vm12, %v1711_v23, 0.0  ;;  %v1739_v53 = vsel %vm808_vm12, %v1712_v47, 0.0  ;;  %v1715_v63 = vmul.f32 %v3103_v39, %v3103_v39  ;;  %v1644_v49 = vld [vmem:[%s3265_s5] sm:$0x1] }
 0x4b5   :  { %v1741_v1 = vsel %vm808_vm12, %v1713_v24, 0.0  ;;  %v1743_v4 = vsel %vm808_vm12, %v1714_v56, 0.0 }
 0x4b6   :  { %v1724_v12 = vadd.f32 %v1723_v15, %v1722_v13  ;;  %v1745_v5 = vsel %vm808_vm12, %v1715_v63, 0.0 }
 0x4b8   :  { %v1726_v18 = vadd.f32 %v1725_v17, %v1724_v12 }
 0x4ba   :  { %v1728_v57 = vadd.f32 %v1727_v19, %v1726_v18 }
 0x4bc   :  { %v1730_v21 = vadd.f32 %v1729_v58, %v1728_v57 }
 0x4be   :  { %v1732_v61 = vadd.f32 %v1731_v22, %v1730_v21 }
 0x4c0   :  { %v1734_v11 = vadd.f32 %v1733_v62, %v1732_v61 }
 0x4c2   :  { %v1736_v16 = vadd.f32 %v1735_v52, %v1734_v11 }
 0x4c4   :  { %v1738_v54 = vadd.f32 %v1737_v0, %v1736_v16 }
 0x4c6   :  { %v1740_v60 = vadd.f32 %v1739_v53, %v1738_v54 }
 0x4c8   :  { %v1742_v2 = vadd.f32 %v1741_v1, %v1740_v60 }
 0x4ca   :  { %v1744_v3 = vadd.f32 %v1743_v4, %v1742_v2 }
 0x4cc   :  { %v1746_v40 = vadd.f32 %v1745_v5, %v1744_v3 }
 0x4ce   :  { %v1747_v41 = vrot.slane %v1746_v40, 4 }
 0x4d0   :  { %v1748_v43 = vadd.f32 %v1747_v41, %v1746_v40 }
 0x4d2   :  { %v1749_v44 = vrot.slane %v1748_v43, 2 }
 0x4d4   :  { %v1750_v45 = vadd.f32 %v1749_v44, %v1748_v43 }
 0x4d6   :  { %v1751_v42 = vrot.slane %v1750_v45, 1 }
 0x4d8   :  { %v1752_v46 = vadd.f32 %v1751_v42, %v1750_v45 }
 0x4da   :  { %v1753_v9 = vmul.f32 0.0078125, %v1752_v46 }
 0x4dc   :  { %v1754_v50 = vadd.f32 1e-05, %v1753_v9 }
 0x4de   :  { %2033 = vrsqrt.f32 %v1754_v50 }
 0x4e8   :  { %v2034_v10 = vpop.eup %2033 }
 0x4e9   :  { %v1756_v51 = vmul.f32 %v2034_v10, %v1644_v49 }
 0x4eb   :  { %v1760_v13 = vrot.slane %v1756_v51, %v922_v35 }
 0x4ed   :  { %v1774_v15 = vmul.f32 %v1760_v13, %v3099_v32  ;;  %v1763_v12 = vmul.f32 %v1760_v13, %v3077_v8  ;;  %v1762_v48 = vmul.f32 %v1760_v13, %v3075_v7  ;;  %v1765_v17 = vmul.f32 %v1760_v13, %v3081_v26 }
 0x4ee   :  { %v1764_v18 = vmul.f32 %v1760_v13, %v3079_v25  ;;  %v1767_v55 = vmul.f32 %v1760_v13, %v3085_v28  ;;  %v1766_v33 = vmul.f32 %v1760_v13, %v3083_v27  ;;  %v1769_v35 = vmul.f32 %v1760_v13, %v3089_v36 }
 0x4ef   :  { %v1785_v19 = vadd.f32 %v3161_v14, %v1763_v12  ;;  %v1784_v57 = vadd.f32 %v3161_v14, %v1762_v48  ;;  %v1787_v8 = vadd.f32 %v3161_v14, %v1765_v17  ;;  %v1768_v25 = vmul.f32 %v1760_v13, %v3087_v29 }
 0x4f0   :  { %v1786_v7 = vadd.f32 %v3161_v14, %v1764_v18  ;;  %v1789_v26 = vadd.f32 %v3161_v14, %v1767_v55  ;;  %v1771_v27 = vmul.f32 %v1760_v13, %v3093_v31  ;;  %v1770_v28 = vmul.f32 %v1760_v13, %v3091_v37 }
 0x4f1   :  { %v1801_v20 = vmax.f32 %v1785_v19, 0.0  ;;  %v1800_v32 = vmax.f32 %v1784_v57, 0.0  ;;  %v1773_v36 = vmul.f32 %v1760_v13, %v3097_v30  ;;  %v1772_v58 = vmul.f32 %v1760_v13, %v3095_v34 }
 0x4f2   :  { %v1775_v21 = vmul.f32 %v1760_v13, %v3101_v38  ;;  %v1776_v59 = vmul.f32 %v1760_v13, %v3103_v39  ;;  %v1803_v22 = vmax.f32 %v1787_v8, 0.0  ;;  %v1802_v61 = vmax.f32 %v1786_v7, 0.0 }
 0x4f3   :  { %1822 = vrot.lane.b32.xlu1 %v1801_v20, %s2040_s23  ;;  %1817 = vrot.lane.b32.xlu0 %v1800_v32, %s2042_s29  ;;  %v1788_v23 = vadd.f32 %v3161_v14, %v1766_v33  ;;  %v1761_v62 = vmul.f32 %v1760_v13, %v3073_v6  ;;  %v1791_v37 = vadd.f32 %v3161_v14, %v1769_v35  ;;  %v1805_v31 = vmax.f32 %v1789_v26, 0.0  ;;  %s2050_s23 = smov 72   ;;  %s2051_s29 = smov 96  }
 0x4f4   :  { %v1790_v30 = vadd.f32 %v3161_v14, %v1768_v25  ;;  %v1793_v11 = vadd.f32 %v3161_v14, %v1771_v27  ;;  %v1792_v47 = vadd.f32 %v3161_v14, %v1770_v28  ;;  %v1795_v24 = vadd.f32 %v3161_v14, %v1773_v36 }
 0x4f5   :  { %v1783_v29 = vadd.f32 %v3161_v14, %v1761_v62  ;;  %v1804_v34 = vmax.f32 %v1788_v23, 0.0  ;;  %v1807_v6 = vmax.f32 %v1791_v37, 0.0  ;;  %v1794_v0 = vadd.f32 %v3161_v14, %v1772_v58 }
 0x4f6   :  { %v1806_v39 = vmax.f32 %v1790_v30, 0.0  ;;  %v1809_v52 = vmax.f32 %v1793_v11, 0.0  ;;  %v1808_v16 = vmax.f32 %v1792_v47, 0.0  ;;  %v1796_v54 = vadd.f32 %v3161_v14, %v1774_v15 }
 0x4f7   :  { %1832 = vrot.lane.b32.xlu1 %v1803_v22, %s2044_s10  ;;  %1827 = vrot.lane.b32.xlu0 %v1802_v61, %s2038_s17  ;;  %v1799_v38 = vmax.f32 %v1783_v29, 0.0  ;;  %s2049_s17 = smov 80   ;;  %v1811_v56 = vmax.f32 %v1795_v24, 0.0  ;;  %v1810_v53 = vmax.f32 %v1794_v0, 0.0  ;;  %v1797_v60 = vadd.f32 %v3161_v14, %v1775_v21  ;;  %s2054_s10 = smov 104  }
 0x4f8   :  { %v1812_v63 = vmax.f32 %v1796_v54, 0.0  ;;  %v1798_v2 = vadd.f32 %v3161_v14, %v1776_v59 }
 0x4f9   :  { %1815 = vst.msk [vmem:[%s3267_s7] sm:$0xff] %vm808_vm12, %v1799_v38  ;;  %v1813_v1 = vmax.f32 %v1797_v60, 0.0  ;;  %vm1884_vm12 = vcmask 917312  }
 0x4fa   :  { %v1814_v4 = vmax.f32 %v1798_v2, 0.0 }
 0x4fb   :  { %1842 = vrot.lane.b32.xlu1 %v1805_v31, %s2045_s3  ;;  %1837 = vrot.lane.b32.xlu0 %v1804_v34, %s2047_s22 }
 0x4ff   :  { %1852 = vrot.lane.b32.xlu1 %v1807_v6, %s2048_s26  ;;  %1847 = vrot.lane.b32.xlu0 %v1806_v39, %s2046_s18 }
 0x503   :  { %1863 = vrot.lane.b32.xlu1 %v1809_v52, %s2049_s17  ;;  %1857 = vrot.lane.b32.xlu0 %v1808_v16, %s2050_s23 }
 0x507   :  { %1875 = vrot.lane.b32.xlu1 %v1811_v56, %s2051_s29  ;;  %1869 = vrot.lane.b32.xlu0 %v1810_v53, %s2052_s8 }
 0x50b   :  { %1887 = vrot.lane.b32.xlu1 %v1813_v1, %s2053_s9  ;;  %1881 = vrot.lane.b32.xlu0 %v1812_v63, %s2054_s10 }
 0x50f   :  { %1893 = vrot.lane.b32.xlu0 %v1814_v4, %s2055_s1 }
 0x565   :  { %v1823_v3 = vpop.permute.xlu1 %1822  ;;  %v1818_v5 = vpop.permute.xlu0 %1817 }
 0x566   :  { %1820 = vst.msk [vmem:[%s3267_s7] sm:$0xff] %vm1224_vm1, %v1818_v5 }
 0x567   :  { %1825 = vst.msk [vmem:[%s3267_s7] sm:$0xff] %vm1379_vm4, %v1823_v3 }
 0x569   :  { %v1833_v40 = vpop.permute.xlu1 %1832  ;;  %v1828_v41 = vpop.permute.xlu0 %1827 }
 0x56a   :  { %1830 = vst.msk [vmem:[%s3267_s7] sm:$0xff] %vm1112_vm15, %v1828_v41 }
 0x56b   :  { %1835 = vst.msk [vmem:[%s3267_s7] sm:$0xff] %vm1273_vm2, %v1833_v40 }
 0x56d   :  { %v1843_v43 = vpop.permute.xlu1 %1842  ;;  %v1838_v44 = vpop.permute.xlu0 %1837 }
 0x56e   :  { %1840 = vst.msk [vmem:[%s3267_s7] sm:$0xff] %vm1428_vm5, %v1838_v44 }
 0x56f   :  { %1845 = vst.msk [vmem:[%s3267_s7] sm:$0xff] %vm1155_vm0, %v1843_v43 }
 0x571   :  { %v1853_v45 = vpop.permute.xlu1 %1852  ;;  %v1848_v42 = vpop.permute.xlu0 %1847 }
 0x572   :  { %1850 = vst.msk [vmem:[%s3267_s7] sm:$0xff] %vm1310_vm3, %v1848_v42 }
 0x573   :  { %1855 = vst.msk [vmem:[%s3267_s7] sm:$0xff] %vm1465_vm6, %v1853_v45 }
 0x575   :  { %v1864_v46 = vpop.permute.xlu1 %1863  ;;  %v1858_v9 = vpop.permute.xlu0 %1857 }
 0x576   :  { %1861 = vst.msk [vmem:[%s3267_s7] sm:$0xff] %vm1860_vm8, %v1858_v9 }
 0x577   :  { %1867 = vst.msk [vmem:[%s3267_s7] sm:$0xff] %vm1866_vm9, %v1864_v46 }
 0x579   :  { %v1876_v50 = vpop.permute.xlu1 %1875  ;;  %v1870_v49 = vpop.permute.xlu0 %1869 }
 0x57a   :  { %1873 = vst.msk [vmem:[%s3267_s7] sm:$0xff] %vm1872_vm10, %v1870_v49 }
 0x57b   :  { %1879 = vst.msk [vmem:[%s3267_s7] sm:$0xff] %vm1878_vm11, %v1876_v50 }
 0x57d   :  { %v1888_v10 = vpop.permute.xlu1 %1887  ;;  %v1882_v51 = vpop.permute.xlu0 %1881 }
 0x57e   :  { %1885 = vst.msk [vmem:[%s3267_s7] sm:$0xff] %vm1884_vm12, %v1882_v51 }
 0x57f   :  { %1891 = vst.msk [vmem:[%s3267_s7] sm:$0xff] %vm1890_vm13, %v1888_v10 }
 0x581   :  { %v1894_v13 = vpop.permute.xlu0 %1893 }
 0x582   :  { %1897 = vst.msk [vmem:[%s3267_s7] sm:$0xff] %vm1896_vm14, %v1894_v13 }

</bundles_post_ra>
